<compile_context>
chip_gen: v7x
topology: tpu7x:2x2x1
jax: 0.10.0
libtpu: 0.0.40
codegen_flags: <defaults>
</compile_context>

<pallas_src>
import functools

import jax
import jax.numpy as jnp
from jax.experimental import pallas as pl
from jax.experimental.pallas import tpu as pltpu


# ---------------------------------------------------------------------------
# In-kernel helpers
# ---------------------------------------------------------------------------

def _small_matmul(a, b):
    """a @ b via unrolled VPU broadcast-FMAs over the (small) contraction dim.

    Channel counts are 2-8, so an MXU matmul would be latency-bound on an
    almost-empty systolic array; the VPU keeps the kernel memory-bound."""
    k = a.shape[1]
    acc = a[:, 0:1] * b[0:1, :]
    for i in range(1, k):
        acc = acc + a[:, i:i + 1] * b[i:i + 1, :]
    return acc


def _chunks(total, chunk):
    """Static (start, width) lane sub-chunks covering [0, total)."""
    out = []
    start = 0
    while start < total:
        width = min(chunk, total - start)
        out.append((start, width))
        start += width
    return out


def _fused_stats_kernel(x_ref, w1_ref, wx_ref,
                        psum1_ref, psq1_ref, pmax1_ref, pmin1_ref,
                        psum2_ref, psq2_ref,
                        *, s_cols, bb, lane_chunk):
    """Single sweep over x producing, per (batch, out-channel):
      conv_in : sum(y1), sum(y1^2), max(y1), min(y1)   over all N points
      conv_out: sum(u),  sum(u^2)                      over the first S points
    with y1 = W1 @ x and u = Wx @ x (bias-free; biases are folded later)."""
    j = pl.program_id(1)
    tn = x_ref.shape[-1]
    col0 = j * tn

    @pl.when(j == 0)
    def _():
        psum1_ref[...] = jnp.zeros_like(psum1_ref)
        psq1_ref[...] = jnp.zeros_like(psq1_ref)
        pmax1_ref[...] = jnp.full(pmax1_ref.shape, -jnp.inf, pmax1_ref.dtype)
        pmin1_ref[...] = jnp.full(pmin1_ref.shape, jnp.inf, pmin1_ref.dtype)
        psum2_ref[...] = jnp.zeros_like(psum2_ref)
        psq2_ref[...] = jnp.zeros_like(psq2_ref)

    w1 = w1_ref[...].astype(jnp.float32)      # (C2, C)
    wx = wx_ref[...].astype(jnp.float32)      # (Cout, C)

    for b in range(bb):
        for cs, cw in _chunks(tn, lane_chunk):
            xb = x_ref[b, :, cs:cs + cw].astype(jnp.float32)      # (C, cw)

            # ---- conv_in stats (all columns) ----
            y = _small_matmul(w1, xb)                             # (C2, cw)
            psum1_ref[b] += jnp.sum(y, axis=-1, keepdims=True)
            psq1_ref[b] += jnp.sum(y * y, axis=-1, keepdims=True)
            pmax1_ref[b] = jnp.maximum(pmax1_ref[b],
                                       jnp.max(y, axis=-1, keepdims=True))
            pmin1_ref[b] = jnp.minimum(pmin1_ref[b],
                                       jnp.min(y, axis=-1, keepdims=True))

            # ---- conv_out stats (columns < S only) ----
            @pl.when(col0 + cs < s_cols)
            def _(xb=xb, cs=cs, cw=cw, b=b):
                u = _small_matmul(wx, xb)                         # (Cout, cw)
                col = (col0 + cs
                       + jax.lax.broadcasted_iota(jnp.int32, (1, cw), 1))
                um = jnp.where(col < s_cols, u, 0.0)
                psum2_ref[b] += jnp.sum(um, axis=-1, keepdims=True)
                psq2_ref[b] += jnp.sum(um * um, axis=-1, keepdims=True)


def _fc_kernel(psum1_ref, psq1_ref, pmax1_ref, pmin1_ref, g1_ref, be1_ref,
               psum2_ref, psq2_ref, g2_ref, be2_ref,
               wfc_ref, bfc_ref, gfc_ref, befc_ref, wg_ref, b2_ref,
               xg_ref, gconst_ref, scale2_ref, shift2_ref,
               *, eps, count1, count2, s_cols):
    """All the tiny glue in one kernel: fold conv_in's BN, recover x_global via
    the min/max trick, run FC (Linear + BatchNorm1d over batch + ReLU), emit
    conv_out's per-batch constant column, and fold conv_out's BN analytically."""
    # ---- conv_in BN fold (training-mode batch stats; conv bias b1 cancels) ----
    csum1 = jnp.sum(psum1_ref[...], axis=0, keepdims=True)        # (1, C2)
    csq1 = jnp.sum(psq1_ref[...], axis=0, keepdims=True)
    mu1 = csum1 * (1.0 / count1)
    var1 = jnp.maximum(csq1 * (1.0 / count1) - mu1 * mu1, 0.0)    # clamp
    scale1 = g1_ref[...] * jax.lax.rsqrt(var1 + eps)
    shift1 = be1_ref[...] - mu1 * scale1
    # max_n relu(scale*y+shift) == relu(scale*max_n y+shift) if scale>=0, else
    # relu(scale*min_n y+shift): keyed on sign(scale) since gamma may be <0.
    y_ext = jnp.where(scale1 >= 0.0, pmax1_ref[...], pmin1_ref[...])  # (B, C2)
    xg_pre = jnp.maximum(y_ext * scale1 + shift1, 0.0)

    # ---- fc: Linear + BatchNorm1d over the batch + ReLU ----
    z = _small_matmul(xg_pre, wfc_ref[...]) + bfc_ref[...]        # (B, Cfc)
    mu = jnp.mean(z, axis=0, keepdims=True)
    var = jnp.maximum(jnp.mean((z - mu) * (z - mu), axis=0, keepdims=True), 0.0)
    zr = jnp.maximum((z - mu) * jax.lax.rsqrt(var + eps) * gfc_ref[...]
                     + befc_ref[...], 0.0)
    xg_ref[...] = zr                                              # x_global out

    # ---- conv_out per-batch constant column (x_global part of concat + b2) ----
    g = _small_matmul(zr, wg_ref[...]) + b2_ref[...]              # (B, Cout)
    gconst_ref[...] = g

    # ---- conv_out BN fold with gconst folded analytically into raw u-stats ----
    su = psum2_ref[...]                                           # (B, Cout)
    sq = psq2_ref[...]
    csum2 = jnp.sum(su + s_cols * g, axis=0, keepdims=True)
    csq2 = jnp.sum(sq + 2.0 * g * su + s_cols * g * g, axis=0, keepdims=True)
    mu2 = csum2 * (1.0 / count2)
    var2 = jnp.maximum(csq2 * (1.0 / count2) - mu2 * mu2, 0.0)    # clamp
    scale2 = g2_ref[...] * jax.lax.rsqrt(var2 + eps)
    scale2_ref[...] = scale2
    shift2_ref[...] = be2_ref[...] - mu2 * scale2


def _conv_out_apply_kernel(x_ref, wx_ref, gc_ref, scale_ref, shift_ref, o_ref,
                           *, bb, lane_chunk):
    """conv_out apply: fused conv (+ per-batch x_global/bias constant) + BN
    affine + ReLU + residual add of ori_x[:, :, :S].  Lane-dense stores."""
    wx = wx_ref[...].astype(jnp.float32)
    scale = scale_ref[...]
    shift = shift_ref[...]
    ts = x_ref.shape[-1]
    for b in range(bb):
        g = gc_ref[b]                                             # (Cout, 1)
        for cs, cw in _chunks(ts, lane_chunk):
            xb = x_ref[b, :, cs:cs + cw].astype(jnp.float32)      # (C, cw)
            y = _small_matmul(wx, xb) + g
            z = jnp.maximum(y * scale + shift, 0.0)
            o_ref[b, :, cs:cs + cw] = z + xb                      # + ori_x slice


# ---------------------------------------------------------------------------
# Host-side wrappers
# ---------------------------------------------------------------------------

def _pick_tile(n, preferred):
    """Largest multiple-of-128 divisor of n not exceeding `preferred`."""
    assert n % 128 == 0, "point dimension must be a multiple of 128"
    # TODO(synk): remainder-tile / padding path for ragged N or output_scale.
    t = min(preferred, n)
    t -= t % 128
    while n % t != 0:
        t -= 128
    return t


def _pick_batch_block(b, per_batch_bytes, target_bytes, min_outer_blocks=2,
                      max_bytes=4 << 20):
    """Smallest divisor of `b` whose per-grid-step payload reaches target_bytes,
    while keeping >= min_outer_blocks blocks on the (parallel) batch-block axis
    (when b allows) so both v7x TensorCores have work, and capping VMEM use."""
    max_bb = b if b < min_outer_blocks else b // min_outer_blocks
    bb = 1
    for cand in range(1, max_bb + 1):
        if b % cand == 0 and cand * per_batch_bytes <= max_bytes:
            bb = cand
            if cand * per_batch_bytes >= target_bytes:
                break
    return bb


def hierarchical_layer_forward(x, params, output_scale, eps=1e-5,
                               preferred_tile=16384, lane_chunk=1024,
                               target_step_bytes=512 * 1024,
                               stream_dtype=jnp.float32):
    """Pallas forward of HierarchicalLayer (with_fc=True, with_last=False,
    neighbor_feature=False).  Returns (out, x_global) like the PyTorch module.

    stream_dtype: dtype used to stream x over HBM (jnp.bfloat16 halves the
    dominant read bytes on v5e/v6e; math stays f32 inside the kernels)."""
    B, C, N = x.shape
    S = output_scale
    C2 = 2 * C                         # conv_in output channels
    Cfc = C // 2                       # fc output channels
    Cout = params["w2"].shape[0]       # conv_out output channels
    assert Cout == C, "residual add requires output_dim == input_dim"
    assert S <= N

    tn = _pick_tile(N, preferred_tile)
    ts = _pick_tile(S, preferred_tile)

    x_stream = x.astype(stream_dtype)
    esize = jnp.dtype(stream_dtype).itemsize
    bb_n = _pick_batch_block(B, C * tn * esize, target_step_bytes)
    bb_s = _pick_batch_block(B, (C * esize + Cout * 4) * ts, target_step_bytes)

    w1f = params["w1"].astype(jnp.float32)                 # (2C, C)
    w2f = params["w2"].astype(jnp.float32)                 # (C, C//2 + C)
    wgf = w2f[:, :Cfc]                                     # x_global columns
    wxf = w2f[:, Cfc:]                                     # ori_x columns

    # ---- Pass 1: fused conv_in / conv_out statistics (single read of x) ----
    psum1, psq1, pmax1, pmin1, psum2, psq2 = pl.pallas_call(
        functools.partial(_fused_stats_kernel, s_cols=S, bb=bb_n,
                          lane_chunk=lane_chunk),
        out_shape=(jax.ShapeDtypeStruct((B, C2, 1), jnp.float32),
                   jax.ShapeDtypeStruct((B, C2, 1), jnp.float32),
                   jax.ShapeDtypeStruct((B, C2, 1), jnp.float32),
                   jax.ShapeDtypeStruct((B, C2, 1), jnp.float32),
                   jax.ShapeDtypeStruct((B, Cout, 1), jnp.float32),
                   jax.ShapeDtypeStruct((B, Cout, 1), jnp.float32)),
        grid=(B // bb_n, N // tn),
        in_specs=[pl.BlockSpec((bb_n, C, tn), lambda bbi, j: (bbi, 0, j)),
                  pl.BlockSpec((C2, C), lambda bbi, j: (0, 0)),
                  pl.BlockSpec((Cout, C), lambda bbi, j: (0, 0))],
        out_specs=(pl.BlockSpec((bb_n, C2, 1), lambda bbi, j: (bbi, 0, 0)),
                   pl.BlockSpec((bb_n, C2, 1), lambda bbi, j: (bbi, 0, 0)),
                   pl.BlockSpec((bb_n, C2, 1), lambda bbi, j: (bbi, 0, 0)),
                   pl.BlockSpec((bb_n, C2, 1), lambda bbi, j: (bbi, 0, 0)),
                   pl.BlockSpec((bb_n, Cout, 1), lambda bbi, j: (bbi, 0, 0)),
                   pl.BlockSpec((bb_n, Cout, 1), lambda bbi, j: (bbi, 0, 0))),
        compiler_params=pltpu.CompilerParams(
            dimension_semantics=("parallel", "arbitrary")),
    )(x_stream, w1f, wxf)

    # ---- FC block + all BN folds + conv_out per-batch constant (tiny) ----
    xgf, gconst, scale2, shift2 = pl.pallas_call(
        functools.partial(_fc_kernel, eps=eps, count1=float(B * N),
                          count2=float(B * S), s_cols=float(S)),
        out_shape=(jax.ShapeDtypeStruct((B, Cfc), jnp.float32),
                   jax.ShapeDtypeStruct((B, Cout), jnp.float32),
                   jax.ShapeDtypeStruct((1, Cout), jnp.float32),
                   jax.ShapeDtypeStruct((1, Cout), jnp.float32)),
    )(psum1.reshape(B, C2), psq1.reshape(B, C2),
      pmax1.reshape(B, C2), pmin1.reshape(B, C2),
      params["g1"].astype(jnp.float32).reshape(1, C2),
      params["be1"].astype(jnp.float32).reshape(1, C2),
      psum2.reshape(B, Cout), psq2.reshape(B, Cout),
      params["g2"].astype(jnp.float32).reshape(1, Cout),
      params["be2"].astype(jnp.float32).reshape(1, Cout),
      params["wfc"].astype(jnp.float32).T,                 # (2C, Cfc)
      params["bfc"].astype(jnp.float32).reshape(1, Cfc),
      params["gfc"].astype(jnp.float32).reshape(1, Cfc),
      params["befc"].astype(jnp.float32).reshape(1, Cfc),
      wgf.T,                                               # (Cfc, Cout)
      params["b2"].astype(jnp.float32).reshape(1, Cout))

    # ---- Pass 2: conv_out apply + ReLU + residual (single read of x[:, :, :S]) ----
    out = pl.pallas_call(
        functools.partial(_conv_out_apply_kernel, bb=bb_s,
                          lane_chunk=lane_chunk),
        out_shape=jax.ShapeDtypeStruct((B, Cout, S), jnp.float32),
        grid=(B // bb_s, S // ts),
        in_specs=[pl.BlockSpec((bb_s, C, ts), lambda bbi, j: (bbi, 0, j)),
                  pl.BlockSpec((Cout, C), lambda bbi, j: (0, 0)),
                  pl.BlockSpec((bb_s, Cout, 1), lambda bbi, j: (bbi, 0, 0)),
                  pl.BlockSpec((Cout, 1), lambda bbi, j: (0, 0)),
                  pl.BlockSpec((Cout, 1), lambda bbi, j: (0, 0))],
        out_specs=pl.BlockSpec((bb_s, Cout, ts), lambda bbi, j: (bbi, 0, j)),
        compiler_params=pltpu.CompilerParams(
            dimension_semantics=("parallel", "parallel")),
    )(x_stream, wxf, gconst.reshape(B, Cout, 1),
      scale2.reshape(Cout, 1), shift2.reshape(Cout, 1))

    return out, xgf


# ---------------------------------------------------------------------------
# Pure-JAX reference (mirrors the PyTorch module in training mode)
# ---------------------------------------------------------------------------

def _reference(x, p, S, eps=1e-5):
    B, C, N = x.shape

    def conv1d(v, w, b):
        return jnp.einsum("oc,bcn->bon", w, v) + b[None, :, None]

    def bn_relu(v, g, be):
        mu = jnp.mean(v, axis=(0, 2), keepdims=True)
        var = jnp.mean((v - mu) ** 2, axis=(0, 2), keepdims=True)
        v = (v - mu) / jnp.sqrt(var + eps) * g[None, :, None] + be[None, :, None]
        return jnp.maximum(v, 0.0)

    y = bn_relu(conv1d(x, p["w1"], p["b1"]), p["g1"], p["be1"])
    xg = jnp.max(y, axis=2)                                    # (B, 2C)

    z = xg @ p["wfc"].T + p["bfc"]
    mu = jnp.mean(z, axis=0, keepdims=True)
    var = jnp.mean((z - mu) ** 2, axis=0, keepdims=True)
    xg = jnp.maximum((z - mu) / jnp.sqrt(var + eps) * p["gfc"] + p["befc"], 0.0)

    xs = x[:, :, :S]
    cat = jnp.concatenate(
        [jnp.broadcast_to(xg[:, :, None], (B, xg.shape[1], S)), xs], axis=1)
    y2 = bn_relu(conv1d(cat, p["w2"], p["b2"]), p["g2"], p["be2"])
    return y2 + xs, xg


if __name__ == "__main__":
    key = jax.random.PRNGKey(0)
    B, C, N = 4, 4, 512            # x: (B, C, N), input_dim = 4
    S = 384                        # output_scale (straddles tiles -> mask path)
    C2, Cfc, Cout = 2 * C, C // 2, C

    ks = jax.random.split(key, 12)
    x = jax.random.normal(ks[0], (B, C, N), dtype=jnp.float32)

    params = {
        # conv_in: Conv1d(C, 2C, 1) + BatchNorm1d(2C)
        "w1": jax.random.normal(ks[1], (C2, C), jnp.float32) * 0.2,
        "b1": jax.random.normal(ks[2], (C2,), jnp.float32) * 0.1,
        "g1": 1.0 + 0.1 * jax.random.normal(ks[3], (C2,), jnp.float32),
        "be1": 0.1 * jax.random.normal(ks[4], (C2,), jnp.float32),
        # fc: Linear(2C, C//2) + BatchNorm1d(C//2)
        "wfc": jax.random.normal(ks[5], (Cfc, C2), jnp.float32) * 0.2,
        "bfc": jax.random.normal(ks[6], (Cfc,), jnp.float32) * 0.1,
        "gfc": 1.0 + 0.1 * jax.random.normal(ks[7], (Cfc,), jnp.float32),
        "befc": 0.1 * jax.random.normal(ks[8], (Cfc,), jnp.float32),
        # conv_out: Conv1d(C//2 + C, C, 1) + BatchNorm1d(C)
        "w2": jax.random.normal(ks[9], (Cout, Cfc + C), jnp.float32) * 0.2,
        "b2": jax.random.normal(ks[10], (Cout,), jnp.float32) * 0.1,
        "g2": 1.0 + 0.1 * jax.random.normal(ks[11], (Cout,), jnp.float32),
        "be2": jnp.zeros((Cout,), jnp.float32),
    }

    ref_out, ref_xg = _reference(x, params, S)

    # 1) Default (big-tile) path.
    out, x_global = hierarchical_layer_forward(x, params, output_scale=S)
    jax.block_until_ready((out, x_global))
    assert out.shape == (B, Cout, S) and x_global.shape == (B, Cfc)
    assert jnp.allclose(out, ref_out, atol=1e-3, rtol=1e-3), "output mismatch"
    assert jnp.allclose(x_global, ref_xg, atol=1e-3, rtol=1e-3), "x_global mismatch"

    # 2) Small-tile / chunked path: exercises multi-tile accumulation over N,
    #    the intra-tile lane-chunk loop, and the S-boundary column mask / gate.
    out2, xg2 = hierarchical_layer_forward(x, params, output_scale=S,
                                           preferred_tile=256, lane_chunk=128)
    jax.block_until_ready((out2, xg2))
    assert jnp.allclose(out2, ref_out, atol=1e-3, rtol=1e-3), "tiled output mismatch"
    assert jnp.allclose(xg2, ref_xg, atol=1e-3, rtol=1e-3), "tiled x_global mismatch"

    # 3) bf16 input streaming (HBM-byte saving for v5e/v6e); loose sanity bound.
    out3, xg3 = hierarchical_layer_forward(x, params, output_scale=S,
                                           stream_dtype=jnp.bfloat16)
    jax.block_until_ready((out3, xg3))
    assert bool(jnp.isfinite(out3).all()) and bool(jnp.isfinite(xg3).all())
    assert float(jnp.max(jnp.abs(out3 - ref_out))) < 0.5, "bf16 stream diverged"

    print("KERNEL_OK")
</pallas_src>

<mosaic_0001>
module attributes {stable_mosaic.version = 11 : i64} {
  func.func @_fused_stats_kernel(%arg0: i32, %arg1: i32, %arg2: memref<2x4x512xf32, #tpu.memory_space<vmem>>, %arg3: memref<8x4xf32, #tpu.memory_space<vmem>>, %arg4: memref<4x4xf32, #tpu.memory_space<vmem>>, %arg5: memref<2x8x1xf32, #tpu.memory_space<vmem>>, %arg6: memref<2x8x1xf32, #tpu.memory_space<vmem>>, %arg7: memref<2x8x1xf32, #tpu.memory_space<vmem>>, %arg8: memref<2x8x1xf32, #tpu.memory_space<vmem>>, %arg9: memref<2x4x1xf32, #tpu.memory_space<vmem>>, %arg10: memref<2x4x1xf32, #tpu.memory_space<vmem>>) attributes {dimension_semantics = [#tpu.dimension_semantics<parallel>, #tpu.dimension_semantics<arbitrary>], iteration_bounds = array<i64: 2, 1>, scalar_prefetch = 0 : i64, scratch_operands = 0 : i64, tpu.core_type = #tpu.core_type<tc>, window_params = [{transform_indices = @transform_0, window_bounds = array<i64: 2, 4, 512>}, {pipeline_mode = #tpu.pipeline_mode<synchronous>, transform_indices = @transform_1, window_bounds = array<i64: 8, 4>}, {pipeline_mode = #tpu.pipeline_mode<synchronous>, transform_indices = @transform_2, window_bounds = array<i64: 4, 4>}, {transform_indices = @transform_3, window_bounds = array<i64: 2, 8, 1>}, {transform_indices = @transform_4, window_bounds = array<i64: 2, 8, 1>}, {transform_indices = @transform_5, window_bounds = array<i64: 2, 8, 1>}, {transform_indices = @transform_6, window_bounds = array<i64: 2, 8, 1>}, {transform_indices = @transform_7, window_bounds = array<i64: 2, 4, 1>}, {transform_indices = @transform_8, window_bounds = array<i64: 2, 4, 1>}]} {
    %c512_i32 = arith.constant 512 : i32
    %0 = arith.muli %arg1, %c512_i32 : i32
    %c0_i32 = arith.constant 0 : i32
    %1 = arith.cmpi eq, %arg1, %c0_i32 : i32
    %2 = arith.extui %1 : i1 to i32
    %c0_i32_0 = arith.constant 0 : i32
    %3 = arith.cmpi ne, %2, %c0_i32_0 : i32
    scf.if %3 {
      %cst_69 = arith.constant 0.000000e+00 : f32
      %130 = vector.broadcast %cst_69 : f32 to vector<2x8x1xf32>
      %c0_70 = arith.constant 0 : index
      %c0_71 = arith.constant 0 : index
      %c0_72 = arith.constant 0 : index
      %131 = vector.load %arg5[%c0_70, %c0_71, %c0_72] : memref<2x8x1xf32, #tpu.memory_space<vmem>>, vector<2x8x1xf32>
      tpu.vector_store %arg5[%c0_70, %c0_71, %c0_72], %130 {strides = array<i32>} : memref<2x8x1xf32, #tpu.memory_space<vmem>>, vector<2x8x1xf32>,
      %cst_73 = arith.constant 0.000000e+00 : f32
      %132 = vector.broadcast %cst_73 : f32 to vector<2x8x1xf32>
      %c0_74 = arith.constant 0 : index
      %c0_75 = arith.constant 0 : index
      %c0_76 = arith.constant 0 : index
      %133 = vector.load %arg6[%c0_74, %c0_75, %c0_76] : memref<2x8x1xf32, #tpu.memory_space<vmem>>, vector<2x8x1xf32>
      tpu.vector_store %arg6[%c0_74, %c0_75, %c0_76], %132 {strides = array<i32>} : memref<2x8x1xf32, #tpu.memory_space<vmem>>, vector<2x8x1xf32>,
      %cst_77 = arith.constant 0xFF800000 : f32
      %134 = vector.broadcast %cst_77 : f32 to vector<2x8x1xf32>
      %c0_78 = arith.constant 0 : index
      %c0_79 = arith.constant 0 : index
      %c0_80 = arith.constant 0 : index
      %135 = vector.load %arg7[%c0_78, %c0_79, %c0_80] : memref<2x8x1xf32, #tpu.memory_space<vmem>>, vector<2x8x1xf32>
      tpu.vector_store %arg7[%c0_78, %c0_79, %c0_80], %134 {strides = array<i32>} : memref<2x8x1xf32, #tpu.memory_space<vmem>>, vector<2x8x1xf32>,
      %cst_81 = arith.constant 0x7F800000 : f32
      %136 = vector.broadcast %cst_81 : f32 to vector<2x8x1xf32>
      %c0_82 = arith.constant 0 : index
      %c0_83 = arith.constant 0 : index
      %c0_84 = arith.constant 0 : index
      %137 = vector.load %arg8[%c0_82, %c0_83, %c0_84] : memref<2x8x1xf32, #tpu.memory_space<vmem>>, vector<2x8x1xf32>
      tpu.vector_store %arg8[%c0_82, %c0_83, %c0_84], %136 {strides = array<i32>} : memref<2x8x1xf32, #tpu.memory_space<vmem>>, vector<2x8x1xf32>,
      %cst_85 = arith.constant 0.000000e+00 : f32
      %138 = vector.broadcast %cst_85 : f32 to vector<2x4x1xf32>
      %c0_86 = arith.constant 0 : index
      %c0_87 = arith.constant 0 : index
      %c0_88 = arith.constant 0 : index
      %139 = vector.load %arg9[%c0_86, %c0_87, %c0_88] : memref<2x4x1xf32, #tpu.memory_space<vmem>>, vector<2x4x1xf32>
      tpu.vector_store %arg9[%c0_86, %c0_87, %c0_88], %138 {strides = array<i32>} : memref<2x4x1xf32, #tpu.memory_space<vmem>>, vector<2x4x1xf32>,
      %cst_89 = arith.constant 0.000000e+00 : f32
      %140 = vector.broadcast %cst_89 : f32 to vector<2x4x1xf32>
      %c0_90 = arith.constant 0 : index
      %c0_91 = arith.constant 0 : index
      %c0_92 = arith.constant 0 : index
      %141 = vector.load %arg10[%c0_90, %c0_91, %c0_92] : memref<2x4x1xf32, #tpu.memory_space<vmem>>, vector<2x4x1xf32>
      tpu.vector_store %arg10[%c0_90, %c0_91, %c0_92], %140 {strides = array<i32>} : memref<2x4x1xf32, #tpu.memory_space<vmem>>, vector<2x4x1xf32>,
    } else {
    }
    %c0 = arith.constant 0 : index
    %c0_1 = arith.constant 0 : index
    %4 = vector.load %arg3[%c0, %c0_1] : memref<8x4xf32, #tpu.memory_space<vmem>>, vector<8x4xf32>
    %c0_2 = arith.constant 0 : index
    %c0_3 = arith.constant 0 : index
    %5 = vector.load %arg4[%c0_2, %c0_3] : memref<4x4xf32, #tpu.memory_space<vmem>>, vector<4x4xf32>
    %c0_4 = arith.constant 0 : index
    %c0_5 = arith.constant 0 : index
    %c0_6 = arith.constant 0 : index
    %6 = vector.load %arg2[%c0_4, %c0_5, %c0_6] : memref<2x4x512xf32, #tpu.memory_space<vmem>>, vector<1x4x512xf32>
    %7 = vector.shape_cast %6 : vector<1x4x512xf32> to vector<4x512xf32>
    %8 = vector.extract_strided_slice %4 {offsets = [0, 0], sizes = [8, 1], strides = [1, 1]} : vector<8x4xf32> to vector<8x1xf32>
    %9 = vector.extract_strided_slice %7 {offsets = [0, 0], sizes = [1, 512], strides = [1, 1]} : vector<4x512xf32> to vector<1x512xf32>
    %10 = vector.broadcast %8 : vector<8x1xf32> to vector<8x512xf32>
    %11 = vector.broadcast %9 : vector<1x512xf32> to vector<8x512xf32>
    %12 = arith.mulf %10, %11 : vector<8x512xf32>
    %13 = vector.extract_strided_slice %4 {offsets = [0, 1], sizes = [8, 1], strides = [1, 1]} : vector<8x4xf32> to vector<8x1xf32>
    %14 = vector.extract_strided_slice %7 {offsets = [1, 0], sizes = [1, 512], strides = [1, 1]} : vector<4x512xf32> to vector<1x512xf32>
    %15 = vector.broadcast %13 : vector<8x1xf32> to vector<8x512xf32>
    %16 = vector.broadcast %14 : vector<1x512xf32> to vector<8x512xf32>
    %17 = arith.mulf %15, %16 : vector<8x512xf32>
    %18 = arith.addf %12, %17 : vector<8x512xf32>
    %19 = vector.extract_strided_slice %4 {offsets = [0, 2], sizes = [8, 1], strides = [1, 1]} : vector<8x4xf32> to vector<8x1xf32>
    %20 = vector.extract_strided_slice %7 {offsets = [2, 0], sizes = [1, 512], strides = [1, 1]} : vector<4x512xf32> to vector<1x512xf32>
    %21 = vector.broadcast %19 : vector<8x1xf32> to vector<8x512xf32>
    %22 = vector.broadcast %20 : vector<1x512xf32> to vector<8x512xf32>
    %23 = arith.mulf %21, %22 : vector<8x512xf32>
    %24 = arith.addf %18, %23 : vector<8x512xf32>
    %25 = vector.extract_strided_slice %4 {offsets = [0, 3], sizes = [8, 1], strides = [1, 1]} : vector<8x4xf32> to vector<8x1xf32>
    %26 = vector.extract_strided_slice %7 {offsets = [3, 0], sizes = [1, 512], strides = [1, 1]} : vector<4x512xf32> to vector<1x512xf32>
    %27 = vector.broadcast %25 : vector<8x1xf32> to vector<8x512xf32>
    %28 = vector.broadcast %26 : vector<1x512xf32> to vector<8x512xf32>
    %29 = arith.mulf %27, %28 : vector<8x512xf32>
    %30 = arith.addf %24, %29 : vector<8x512xf32>
    %c0_7 = arith.constant 0 : index
    %c0_8 = arith.constant 0 : index
    %c0_9 = arith.constant 0 : index
    %31 = vector.load %arg5[%c0_7, %c0_8, %c0_9] : memref<2x8x1xf32, #tpu.memory_space<vmem>>, vector<1x8x1xf32>
    %32 = vector.shape_cast %31 : vector<1x8x1xf32> to vector<8x1xf32>
    %cst = arith.constant dense<0.000000e+00> : vector<8xf32>
    %33 = vector.multi_reduction <add>, %30, %cst [1] : vector<8x512xf32> to vector<8xf32>
    %34 = vector.shape_cast %33 : vector<8xf32> to vector<8x1xf32>
    %35 = arith.addf %32, %34 : vector<8x1xf32>
    %c0_10 = arith.constant 0 : index
    %c0_11 = arith.constant 0 : index
    %c0_12 = arith.constant 0 : index
    %36 = vector.load %arg5[%c0_10, %c0_11, %c0_12] : memref<2x8x1xf32, #tpu.memory_space<vmem>>, vector<1x8x1xf32>
    %37 = vector.shape_cast %36 : vector<1x8x1xf32> to vector<8x1xf32>
    %38 = vector.shape_cast %35 : vector<8x1xf32> to vector<1x8x1xf32>
    tpu.vector_store %arg5[%c0_10, %c0_11, %c0_12], %38 {strides = array<i32>} : memref<2x8x1xf32, #tpu.memory_space<vmem>>, vector<1x8x1xf32>,
    %c0_13 = arith.constant 0 : index
    %c0_14 = arith.constant 0 : index
    %c0_15 = arith.constant 0 : index
    %39 = vector.load %arg6[%c0_13, %c0_14, %c0_15] : memref<2x8x1xf32, #tpu.memory_space<vmem>>, vector<1x8x1xf32>
    %40 = vector.shape_cast %39 : vector<1x8x1xf32> to vector<8x1xf32>
    %41 = arith.mulf %30, %30 : vector<8x512xf32>
    %cst_16 = arith.constant dense<0.000000e+00> : vector<8xf32>
    %42 = vector.multi_reduction <add>, %41, %cst_16 [1] : vector<8x512xf32> to vector<8xf32>
    %43 = vector.shape_cast %42 : vector<8xf32> to vector<8x1xf32>
    %44 = arith.addf %40, %43 : vector<8x1xf32>
    %c0_17 = arith.constant 0 : index
    %c0_18 = arith.constant 0 : index
    %c0_19 = arith.constant 0 : index
    %45 = vector.load %arg6[%c0_17, %c0_18, %c0_19] : memref<2x8x1xf32, #tpu.memory_space<vmem>>, vector<1x8x1xf32>
    %46 = vector.shape_cast %45 : vector<1x8x1xf32> to vector<8x1xf32>
    %47 = vector.shape_cast %44 : vector<8x1xf32> to vector<1x8x1xf32>
    tpu.vector_store %arg6[%c0_17, %c0_18, %c0_19], %47 {strides = array<i32>} : memref<2x8x1xf32, #tpu.memory_space<vmem>>, vector<1x8x1xf32>,
    %c0_20 = arith.constant 0 : index
    %c0_21 = arith.constant 0 : index
    %c0_22 = arith.constant 0 : index
    %48 = vector.load %arg7[%c0_20, %c0_21, %c0_22] : memref<2x8x1xf32, #tpu.memory_space<vmem>>, vector<1x8x1xf32>
    %49 = vector.shape_cast %48 : vector<1x8x1xf32> to vector<8x1xf32>
    %cst_23 = arith.constant dense<0xFF800000> : vector<8xf32>
    %50 = vector.multi_reduction <maximumf>, %30, %cst_23 [1] : vector<8x512xf32> to vector<8xf32>
    %51 = vector.shape_cast %50 : vector<8xf32> to vector<8x1xf32>
    %52 = arith.maximumf %49, %51 : vector<8x1xf32>
    %c0_24 = arith.constant 0 : index
    %c0_25 = arith.constant 0 : index
    %c0_26 = arith.constant 0 : index
    %53 = vector.load %arg7[%c0_24, %c0_25, %c0_26] : memref<2x8x1xf32, #tpu.memory_space<vmem>>, vector<1x8x1xf32>
    %54 = vector.shape_cast %53 : vector<1x8x1xf32> to vector<8x1xf32>
    %55 = vector.shape_cast %52 : vector<8x1xf32> to vector<1x8x1xf32>
    tpu.vector_store %arg7[%c0_24, %c0_25, %c0_26], %55 {strides = array<i32>} : memref<2x8x1xf32, #tpu.memory_space<vmem>>, vector<1x8x1xf32>,
    %c0_27 = arith.constant 0 : index
    %c0_28 = arith.constant 0 : index
    %c0_29 = arith.constant 0 : index
    %56 = vector.load %arg8[%c0_27, %c0_28, %c0_29] : memref<2x8x1xf32, #tpu.memory_space<vmem>>, vector<1x8x1xf32>
    %57 = vector.shape_cast %56 : vector<1x8x1xf32> to vector<8x1xf32>
    %cst_30 = arith.constant dense<0x7F800000> : vector<8xf32>
    %58 = vector.multi_reduction <minimumf>, %30, %cst_30 [1] : vector<8x512xf32> to vector<8xf32>
    %59 = vector.shape_cast %58 : vector<8xf32> to vector<8x1xf32>
    %60 = arith.minimumf %57, %59 : vector<8x1xf32>
    %c0_31 = arith.constant 0 : index
    %c0_32 = arith.constant 0 : index
    %c0_33 = arith.constant 0 : index
    %61 = vector.load %arg8[%c0_31, %c0_32, %c0_33] : memref<2x8x1xf32, #tpu.memory_space<vmem>>, vector<1x8x1xf32>
    %62 = vector.shape_cast %61 : vector<1x8x1xf32> to vector<8x1xf32>
    %63 = vector.shape_cast %60 : vector<8x1xf32> to vector<1x8x1xf32>
    tpu.vector_store %arg8[%c0_31, %c0_32, %c0_33], %63 {strides = array<i32>} : memref<2x8x1xf32, #tpu.memory_space<vmem>>, vector<1x8x1xf32>,
    %c0_i32_34 = arith.constant 0 : i32
    %64 = arith.addi %0, %c0_i32_34 : i32
    %c384_i32 = arith.constant 384 : i32
    %65 = arith.cmpi slt, %64, %c384_i32 : i32
    %66 = arith.extui %65 : i1 to i32
    %c0_i32_35 = arith.constant 0 : i32
    %67 = arith.cmpi ne, %66, %c0_i32_35 : i32
    scf.if %67 {
      %130 = vector.extract_strided_slice %5 {offsets = [0, 0], sizes = [4, 1], strides = [1, 1]} : vector<4x4xf32> to vector<4x1xf32>
      %131 = vector.extract_strided_slice %7 {offsets = [0, 0], sizes = [1, 512], strides = [1, 1]} : vector<4x512xf32> to vector<1x512xf32>
      %132 = vector.broadcast %130 : vector<4x1xf32> to vector<4x512xf32>
      %133 = vector.broadcast %131 : vector<1x512xf32> to vector<4x512xf32>
      %134 = arith.mulf %132, %133 : vector<4x512xf32>
      %135 = vector.extract_strided_slice %5 {offsets = [0, 1], sizes = [4, 1], strides = [1, 1]} : vector<4x4xf32> to vector<4x1xf32>
      %136 = vector.extract_strided_slice %7 {offsets = [1, 0], sizes = [1, 512], strides = [1, 1]} : vector<4x512xf32> to vector<1x512xf32>
      %137 = vector.broadcast %135 : vector<4x1xf32> to vector<4x512xf32>
      %138 = vector.broadcast %136 : vector<1x512xf32> to vector<4x512xf32>
      %139 = arith.mulf %137, %138 : vector<4x512xf32>
      %140 = arith.addf %134, %139 : vector<4x512xf32>
      %141 = vector.extract_strided_slice %5 {offsets = [0, 2], sizes = [4, 1], strides = [1, 1]} : vector<4x4xf32> to vector<4x1xf32>
      %142 = vector.extract_strided_slice %7 {offsets = [2, 0], sizes = [1, 512], strides = [1, 1]} : vector<4x512xf32> to vector<1x512xf32>
      %143 = vector.broadcast %141 : vector<4x1xf32> to vector<4x512xf32>
      %144 = vector.broadcast %142 : vector<1x512xf32> to vector<4x512xf32>
      %145 = arith.mulf %143, %144 : vector<4x512xf32>
      %146 = arith.addf %140, %145 : vector<4x512xf32>
      %147 = vector.extract_strided_slice %5 {offsets = [0, 3], sizes = [4, 1], strides = [1, 1]} : vector<4x4xf32> to vector<4x1xf32>
      %148 = vector.extract_strided_slice %7 {offsets = [3, 0], sizes = [1, 512], strides = [1, 1]} : vector<4x512xf32> to vector<1x512xf32>
      %149 = vector.broadcast %147 : vector<4x1xf32> to vector<4x512xf32>
      %150 = vector.broadcast %148 : vector<1x512xf32> to vector<4x512xf32>
      %151 = arith.mulf %149, %150 : vector<4x512xf32>
      %152 = arith.addf %146, %151 : vector<4x512xf32>
      %c0_i32_69 = arith.constant 0 : i32
      %153 = arith.addi %0, %c0_i32_69 : i32
      %154 = tpu.iota {dimensions = array<i32: 1>} : vector<1x512xi32>
      %155 = vector.broadcast %153 : i32 to vector<1x512xi32>
      %156 = arith.addi %155, %154 : vector<1x512xi32>
      %c384_i32_70 = arith.constant 384 : i32
      %157 = vector.broadcast %c384_i32_70 : i32 to vector<1x512xi32>
      %158 = arith.cmpi slt, %156, %157 : vector<1x512xi32>
      %cst_71 = arith.constant 0.000000e+00 : f32
      %159 = vector.shape_cast %158 : vector<1x512xi1> to vector<1x512xi1>
      %160 = vector.broadcast %159 : vector<1x512xi1> to vector<4x512xi1>
      %161 = vector.broadcast %cst_71 : f32 to vector<4x512xf32>
      %162 = arith.select %160, %152, %161 : vector<4x512xi1>, vector<4x512xf32>
      %c0_72 = arith.constant 0 : index
      %c0_73 = arith.constant 0 : index
      %c0_74 = arith.constant 0 : index
      %163 = vector.load %arg9[%c0_72, %c0_73, %c0_74] : memref<2x4x1xf32, #tpu.memory_space<vmem>>, vector<1x4x1xf32>
      %164 = vector.shape_cast %163 : vector<1x4x1xf32> to vector<4x1xf32>
      %cst_75 = arith.constant dense<0.000000e+00> : vector<4xf32>
      %165 = vector.multi_reduction <add>, %162, %cst_75 [1] : vector<4x512xf32> to vector<4xf32>
      %166 = vector.shape_cast %165 : vector<4xf32> to vector<4x1xf32>
      %167 = arith.addf %164, %166 : vector<4x1xf32>
      %c0_76 = arith.constant 0 : index
      %c0_77 = arith.constant 0 : index
      %c0_78 = arith.constant 0 : index
      %168 = vector.load %arg9[%c0_76, %c0_77, %c0_78] : memref<2x4x1xf32, #tpu.memory_space<vmem>>, vector<1x4x1xf32>
      %169 = vector.shape_cast %168 : vector<1x4x1xf32> to vector<4x1xf32>
      %170 = vector.shape_cast %167 : vector<4x1xf32> to vector<1x4x1xf32>
      tpu.vector_store %arg9[%c0_76, %c0_77, %c0_78], %170 {strides = array<i32>} : memref<2x4x1xf32, #tpu.memory_space<vmem>>, vector<1x4x1xf32>,
      %c0_79 = arith.constant 0 : index
      %c0_80 = arith.constant 0 : index
      %c0_81 = arith.constant 0 : index
      %171 = vector.load %arg10[%c0_79, %c0_80, %c0_81] : memref<2x4x1xf32, #tpu.memory_space<vmem>>, vector<1x4x1xf32>
      %172 = vector.shape_cast %171 : vector<1x4x1xf32> to vector<4x1xf32>
      %173 = arith.mulf %162, %162 : vector<4x512xf32>
      %cst_82 = arith.constant dense<0.000000e+00> : vector<4xf32>
      %174 = vector.multi_reduction <add>, %173, %cst_82 [1] : vector<4x512xf32> to vector<4xf32>
      %175 = vector.shape_cast %174 : vector<4xf32> to vector<4x1xf32>
      %176 = arith.addf %172, %175 : vector<4x1xf32>
      %c0_83 = arith.constant 0 : index
      %c0_84 = arith.constant 0 : index
      %c0_85 = arith.constant 0 : index
      %177 = vector.load %arg10[%c0_83, %c0_84, %c0_85] : memref<2x4x1xf32, #tpu.memory_space<vmem>>, vector<1x4x1xf32>
      %178 = vector.shape_cast %177 : vector<1x4x1xf32> to vector<4x1xf32>
      %179 = vector.shape_cast %176 : vector<4x1xf32> to vector<1x4x1xf32>
      tpu.vector_store %arg10[%c0_83, %c0_84, %c0_85], %179 {strides = array<i32>} : memref<2x4x1xf32, #tpu.memory_space<vmem>>, vector<1x4x1xf32>,
    } else {
    }
    %c1 = arith.constant 1 : index
    %c0_36 = arith.constant 0 : index
    %c0_37 = arith.constant 0 : index
    %68 = vector.load %arg2[%c1, %c0_36, %c0_37] : memref<2x4x512xf32, #tpu.memory_space<vmem>>, vector<1x4x512xf32>
    %69 = vector.shape_cast %68 : vector<1x4x512xf32> to vector<4x512xf32>
    %70 = vector.extract_strided_slice %4 {offsets = [0, 0], sizes = [8, 1], strides = [1, 1]} : vector<8x4xf32> to vector<8x1xf32>
    %71 = vector.extract_strided_slice %69 {offsets = [0, 0], sizes = [1, 512], strides = [1, 1]} : vector<4x512xf32> to vector<1x512xf32>
    %72 = vector.broadcast %70 : vector<8x1xf32> to vector<8x512xf32>
    %73 = vector.broadcast %71 : vector<1x512xf32> to vector<8x512xf32>
    %74 = arith.mulf %72, %73 : vector<8x512xf32>
    %75 = vector.extract_strided_slice %4 {offsets = [0, 1], sizes = [8, 1], strides = [1, 1]} : vector<8x4xf32> to vector<8x1xf32>
    %76 = vector.extract_strided_slice %69 {offsets = [1, 0], sizes = [1, 512], strides = [1, 1]} : vector<4x512xf32> to vector<1x512xf32>
    %77 = vector.broadcast %75 : vector<8x1xf32> to vector<8x512xf32>
    %78 = vector.broadcast %76 : vector<1x512xf32> to vector<8x512xf32>
    %79 = arith.mulf %77, %78 : vector<8x512xf32>
    %80 = arith.addf %74, %79 : vector<8x512xf32>
    %81 = vector.extract_strided_slice %4 {offsets = [0, 2], sizes = [8, 1], strides = [1, 1]} : vector<8x4xf32> to vector<8x1xf32>
    %82 = vector.extract_strided_slice %69 {offsets = [2, 0], sizes = [1, 512], strides = [1, 1]} : vector<4x512xf32> to vector<1x512xf32>
    %83 = vector.broadcast %81 : vector<8x1xf32> to vector<8x512xf32>
    %84 = vector.broadcast %82 : vector<1x512xf32> to vector<8x512xf32>
    %85 = arith.mulf %83, %84 : vector<8x512xf32>
    %86 = arith.addf %80, %85 : vector<8x512xf32>
    %87 = vector.extract_strided_slice %4 {offsets = [0, 3], sizes = [8, 1], strides = [1, 1]} : vector<8x4xf32> to vector<8x1xf32>
    %88 = vector.extract_strided_slice %69 {offsets = [3, 0], sizes = [1, 512], strides = [1, 1]} : vector<4x512xf32> to vector<1x512xf32>
    %89 = vector.broadcast %87 : vector<8x1xf32> to vector<8x512xf32>
    %90 = vector.broadcast %88 : vector<1x512xf32> to vector<8x512xf32>
    %91 = arith.mulf %89, %90 : vector<8x512xf32>
    %92 = arith.addf %86, %91 : vector<8x512xf32>
    %c1_38 = arith.constant 1 : index
    %c0_39 = arith.constant 0 : index
    %c0_40 = arith.constant 0 : index
    %93 = vector.load %arg5[%c1_38, %c0_39, %c0_40] : memref<2x8x1xf32, #tpu.memory_space<vmem>>, vector<1x8x1xf32>
    %94 = vector.shape_cast %93 : vector<1x8x1xf32> to vector<8x1xf32>
    %cst_41 = arith.constant dense<0.000000e+00> : vector<8xf32>
    %95 = vector.multi_reduction <add>, %92, %cst_41 [1] : vector<8x512xf32> to vector<8xf32>
    %96 = vector.shape_cast %95 : vector<8xf32> to vector<8x1xf32>
    %97 = arith.addf %94, %96 : vector<8x1xf32>
    %c1_42 = arith.constant 1 : index
    %c0_43 = arith.constant 0 : index
    %c0_44 = arith.constant 0 : index
    %98 = vector.load %arg5[%c1_42, %c0_43, %c0_44] : memref<2x8x1xf32, #tpu.memory_space<vmem>>, vector<1x8x1xf32>
    %99 = vector.shape_cast %98 : vector<1x8x1xf32> to vector<8x1xf32>
    %100 = vector.shape_cast %97 : vector<8x1xf32> to vector<1x8x1xf32>
    tpu.vector_store %arg5[%c1_42, %c0_43, %c0_44], %100 {strides = array<i32>} : memref<2x8x1xf32, #tpu.memory_space<vmem>>, vector<1x8x1xf32>,
    %c1_45 = arith.constant 1 : index
    %c0_46 = arith.constant 0 : index
    %c0_47 = arith.constant 0 : index
    %101 = vector.load %arg6[%c1_45, %c0_46, %c0_47] : memref<2x8x1xf32, #tpu.memory_space<vmem>>, vector<1x8x1xf32>
    %102 = vector.shape_cast %101 : vector<1x8x1xf32> to vector<8x1xf32>
    %103 = arith.mulf %92, %92 : vector<8x512xf32>
    %cst_48 = arith.constant dense<0.000000e+00> : vector<8xf32>
    %104 = vector.multi_reduction <add>, %103, %cst_48 [1] : vector<8x512xf32> to vector<8xf32>
    %105 = vector.shape_cast %104 : vector<8xf32> to vector<8x1xf32>
    %106 = arith.addf %102, %105 : vector<8x1xf32>
    %c1_49 = arith.constant 1 : index
    %c0_50 = arith.constant 0 : index
    %c0_51 = arith.constant 0 : index
    %107 = vector.load %arg6[%c1_49, %c0_50, %c0_51] : memref<2x8x1xf32, #tpu.memory_space<vmem>>, vector<1x8x1xf32>
    %108 = vector.shape_cast %107 : vector<1x8x1xf32> to vector<8x1xf32>
    %109 = vector.shape_cast %106 : vector<8x1xf32> to vector<1x8x1xf32>
    tpu.vector_store %arg6[%c1_49, %c0_50, %c0_51], %109 {strides = array<i32>} : memref<2x8x1xf32, #tpu.memory_space<vmem>>, vector<1x8x1xf32>,
    %c1_52 = arith.constant 1 : index
    %c0_53 = arith.constant 0 : index
    %c0_54 = arith.constant 0 : index
    %110 = vector.load %arg7[%c1_52, %c0_53, %c0_54] : memref<2x8x1xf32, #tpu.memory_space<vmem>>, vector<1x8x1xf32>
    %111 = vector.shape_cast %110 : vector<1x8x1xf32> to vector<8x1xf32>
    %cst_55 = arith.constant dense<0xFF800000> : vector<8xf32>
    %112 = vector.multi_reduction <maximumf>, %92, %cst_55 [1] : vector<8x512xf32> to vector<8xf32>
    %113 = vector.shape_cast %112 : vector<8xf32> to vector<8x1xf32>
    %114 = arith.maximumf %111, %113 : vector<8x1xf32>
    %c1_56 = arith.constant 1 : index
    %c0_57 = arith.constant 0 : index
    %c0_58 = arith.constant 0 : index
    %115 = vector.load %arg7[%c1_56, %c0_57, %c0_58] : memref<2x8x1xf32, #tpu.memory_space<vmem>>, vector<1x8x1xf32>
    %116 = vector.shape_cast %115 : vector<1x8x1xf32> to vector<8x1xf32>
    %117 = vector.shape_cast %114 : vector<8x1xf32> to vector<1x8x1xf32>
    tpu.vector_store %arg7[%c1_56, %c0_57, %c0_58], %117 {strides = array<i32>} : memref<2x8x1xf32, #tpu.memory_space<vmem>>, vector<1x8x1xf32>,
    %c1_59 = arith.constant 1 : index
    %c0_60 = arith.constant 0 : index
    %c0_61 = arith.constant 0 : index
    %118 = vector.load %arg8[%c1_59, %c0_60, %c0_61] : memref<2x8x1xf32, #tpu.memory_space<vmem>>, vector<1x8x1xf32>
    %119 = vector.shape_cast %118 : vector<1x8x1xf32> to vector<8x1xf32>
    %cst_62 = arith.constant dense<0x7F800000> : vector<8xf32>
    %120 = vector.multi_reduction <minimumf>, %92, %cst_62 [1] : vector<8x512xf32> to vector<8xf32>
    %121 = vector.shape_cast %120 : vector<8xf32> to vector<8x1xf32>
    %122 = arith.minimumf %119, %121 : vector<8x1xf32>
    %c1_63 = arith.constant 1 : index
    %c0_64 = arith.constant 0 : index
    %c0_65 = arith.constant 0 : index
    %123 = vector.load %arg8[%c1_63, %c0_64, %c0_65] : memref<2x8x1xf32, #tpu.memory_space<vmem>>, vector<1x8x1xf32>
    %124 = vector.shape_cast %123 : vector<1x8x1xf32> to vector<8x1xf32>
    %125 = vector.shape_cast %122 : vector<8x1xf32> to vector<1x8x1xf32>
    tpu.vector_store %arg8[%c1_63, %c0_64, %c0_65], %125 {strides = array<i32>} : memref<2x8x1xf32, #tpu.memory_space<vmem>>, vector<1x8x1xf32>,
    %c0_i32_66 = arith.constant 0 : i32
    %126 = arith.addi %0, %c0_i32_66 : i32
    %c384_i32_67 = arith.constant 384 : i32
    %127 = arith.cmpi slt, %126, %c384_i32_67 : i32
    %128 = arith.extui %127 : i1 to i32
    %c0_i32_68 = arith.constant 0 : i32
    %129 = arith.cmpi ne, %128, %c0_i32_68 : i32
    scf.if %129 {
      %130 = vector.extract_strided_slice %5 {offsets = [0, 0], sizes = [4, 1], strides = [1, 1]} : vector<4x4xf32> to vector<4x1xf32>
      %131 = vector.extract_strided_slice %69 {offsets = [0, 0], sizes = [1, 512], strides = [1, 1]} : vector<4x512xf32> to vector<1x512xf32>
      %132 = vector.broadcast %130 : vector<4x1xf32> to vector<4x512xf32>
      %133 = vector.broadcast %131 : vector<1x512xf32> to vector<4x512xf32>
      %134 = arith.mulf %132, %133 : vector<4x512xf32>
      %135 = vector.extract_strided_slice %5 {offsets = [0, 1], sizes = [4, 1], strides = [1, 1]} : vector<4x4xf32> to vector<4x1xf32>
      %136 = vector.extract_strided_slice %69 {offsets = [1, 0], sizes = [1, 512], strides = [1, 1]} : vector<4x512xf32> to vector<1x512xf32>
      %137 = vector.broadcast %135 : vector<4x1xf32> to vector<4x512xf32>
      %138 = vector.broadcast %136 : vector<1x512xf32> to vector<4x512xf32>
      %139 = arith.mulf %137, %138 : vector<4x512xf32>
      %140 = arith.addf %134, %139 : vector<4x512xf32>
      %141 = vector.extract_strided_slice %5 {offsets = [0, 2], sizes = [4, 1], strides = [1, 1]} : vector<4x4xf32> to vector<4x1xf32>
      %142 = vector.extract_strided_slice %69 {offsets = [2, 0], sizes = [1, 512], strides = [1, 1]} : vector<4x512xf32> to vector<1x512xf32>
      %143 = vector.broadcast %141 : vector<4x1xf32> to vector<4x512xf32>
      %144 = vector.broadcast %142 : vector<1x512xf32> to vector<4x512xf32>
      %145 = arith.mulf %143, %144 : vector<4x512xf32>
      %146 = arith.addf %140, %145 : vector<4x512xf32>
      %147 = vector.extract_strided_slice %5 {offsets = [0, 3], sizes = [4, 1], strides = [1, 1]} : vector<4x4xf32> to vector<4x1xf32>
      %148 = vector.extract_strided_slice %69 {offsets = [3, 0], sizes = [1, 512], strides = [1, 1]} : vector<4x512xf32> to vector<1x512xf32>
      %149 = vector.broadcast %147 : vector<4x1xf32> to vector<4x512xf32>
      %150 = vector.broadcast %148 : vector<1x512xf32> to vector<4x512xf32>
      %151 = arith.mulf %149, %150 : vector<4x512xf32>
      %152 = arith.addf %146, %151 : vector<4x512xf32>
      %c0_i32_69 = arith.constant 0 : i32
      %153 = arith.addi %0, %c0_i32_69 : i32
      %154 = tpu.iota {dimensions = array<i32: 1>} : vector<1x512xi32>
      %155 = vector.broadcast %153 : i32 to vector<1x512xi32>
      %156 = arith.addi %155, %154 : vector<1x512xi32>
      %c384_i32_70 = arith.constant 384 : i32
      %157 = vector.broadcast %c384_i32_70 : i32 to vector<1x512xi32>
      %158 = arith.cmpi slt, %156, %157 : vector<1x512xi32>
      %cst_71 = arith.constant 0.000000e+00 : f32
      %159 = vector.shape_cast %158 : vector<1x512xi1> to vector<1x512xi1>
      %160 = vector.broadcast %159 : vector<1x512xi1> to vector<4x512xi1>
      %161 = vector.broadcast %cst_71 : f32 to vector<4x512xf32>
      %162 = arith.select %160, %152, %161 : vector<4x512xi1>, vector<4x512xf32>
      %c1_72 = arith.constant 1 : index
      %c0_73 = arith.constant 0 : index
      %c0_74 = arith.constant 0 : index
      %163 = vector.load %arg9[%c1_72, %c0_73, %c0_74] : memref<2x4x1xf32, #tpu.memory_space<vmem>>, vector<1x4x1xf32>
      %164 = vector.shape_cast %163 : vector<1x4x1xf32> to vector<4x1xf32>
      %cst_75 = arith.constant dense<0.000000e+00> : vector<4xf32>
      %165 = vector.multi_reduction <add>, %162, %cst_75 [1] : vector<4x512xf32> to vector<4xf32>
      %166 = vector.shape_cast %165 : vector<4xf32> to vector<4x1xf32>
      %167 = arith.addf %164, %166 : vector<4x1xf32>
      %c1_76 = arith.constant 1 : index
      %c0_77 = arith.constant 0 : index
      %c0_78 = arith.constant 0 : index
      %168 = vector.load %arg9[%c1_76, %c0_77, %c0_78] : memref<2x4x1xf32, #tpu.memory_space<vmem>>, vector<1x4x1xf32>
      %169 = vector.shape_cast %168 : vector<1x4x1xf32> to vector<4x1xf32>
      %170 = vector.shape_cast %167 : vector<4x1xf32> to vector<1x4x1xf32>
      tpu.vector_store %arg9[%c1_76, %c0_77, %c0_78], %170 {strides = array<i32>} : memref<2x4x1xf32, #tpu.memory_space<vmem>>, vector<1x4x1xf32>,
      %c1_79 = arith.constant 1 : index
      %c0_80 = arith.constant 0 : index
      %c0_81 = arith.constant 0 : index
      %171 = vector.load %arg10[%c1_79, %c0_80, %c0_81] : memref<2x4x1xf32, #tpu.memory_space<vmem>>, vector<1x4x1xf32>
      %172 = vector.shape_cast %171 : vector<1x4x1xf32> to vector<4x1xf32>
      %173 = arith.mulf %162, %162 : vector<4x512xf32>
      %cst_82 = arith.constant dense<0.000000e+00> : vector<4xf32>
      %174 = vector.multi_reduction <add>, %173, %cst_82 [1] : vector<4x512xf32> to vector<4xf32>
      %175 = vector.shape_cast %174 : vector<4xf32> to vector<4x1xf32>
      %176 = arith.addf %172, %175 : vector<4x1xf32>
      %c1_83 = arith.constant 1 : index
      %c0_84 = arith.constant 0 : index
      %c0_85 = arith.constant 0 : index
      %177 = vector.load %arg10[%c1_83, %c0_84, %c0_85] : memref<2x4x1xf32, #tpu.memory_space<vmem>>, vector<1x4x1xf32>
      %178 = vector.shape_cast %177 : vector<1x4x1xf32> to vector<4x1xf32>
      %179 = vector.shape_cast %176 : vector<4x1xf32> to vector<1x4x1xf32>
      tpu.vector_store %arg10[%c1_83, %c0_84, %c0_85], %179 {strides = array<i32>} : memref<2x4x1xf32, #tpu.memory_space<vmem>>, vector<1x4x1xf32>,
    } else {
    }
    return
  }
  func.func @transform_0(%arg0: i32, %arg1: i32) -> (i32, i32, i32) {
    %c0_i32 = arith.constant 0 : i32
    %c0_i32_0 = arith.constant 0 : i32
    return %arg0, %c0_i32, %arg1 : i32, i32, i32
  }
  func.func @transform_1(%arg0: i32, %arg1: i32) -> (i32, i32) {
    %c0_i32 = arith.constant 0 : i32
    %c0_i32_0 = arith.constant 0 : i32
    %c0_i32_1 = arith.constant 0 : i32
    return %c0_i32, %c0_i32_0 : i32, i32
  }
  func.func @transform_2(%arg0: i32, %arg1: i32) -> (i32, i32) {
    %c0_i32 = arith.constant 0 : i32
    %c0_i32_0 = arith.constant 0 : i32
    %c0_i32_1 = arith.constant 0 : i32
    return %c0_i32, %c0_i32_0 : i32, i32
  }
  func.func @transform_3(%arg0: i32, %arg1: i32) -> (i32, i32, i32) {
    %c0_i32 = arith.constant 0 : i32
    %c0_i32_0 = arith.constant 0 : i32
    %c0_i32_1 = arith.constant 0 : i32
    return %arg0, %c0_i32, %c0_i32_0 : i32, i32, i32
  }
  func.func @transform_4(%arg0: i32, %arg1: i32) -> (i32, i32, i32) {
    %c0_i32 = arith.constant 0 : i32
    %c0_i32_0 = arith.constant 0 : i32
    %c0_i32_1 = arith.constant 0 : i32
    return %arg0, %c0_i32, %c0_i32_0 : i32, i32, i32
  }
  func.func @transform_5(%arg0: i32, %arg1: i32) -> (i32, i32, i32) {
    %c0_i32 = arith.constant 0 : i32
    %c0_i32_0 = arith.constant 0 : i32
    %c0_i32_1 = arith.constant 0 : i32
    return %arg0, %c0_i32, %c0_i32_0 : i32, i32, i32
  }
  func.func @transform_6(%arg0: i32, %arg1: i32) -> (i32, i32, i32) {
    %c0_i32 = arith.constant 0 : i32
    %c0_i32_0 = arith.constant 0 : i32
    %c0_i32_1 = arith.constant 0 : i32
    return %arg0, %c0_i32, %c0_i32_0 : i32, i32, i32
  }
  func.func @transform_7(%arg0: i32, %arg1: i32) -> (i32, i32, i32) {
    %c0_i32 = arith.constant 0 : i32
    %c0_i32_0 = arith.constant 0 : i32
    %c0_i32_1 = arith.constant 0 : i32
    return %arg0, %c0_i32, %c0_i32_0 : i32, i32, i32
  }
  func.func @transform_8(%arg0: i32, %arg1: i32) -> (i32, i32, i32) {
    %c0_i32 = arith.constant 0 : i32
    %c0_i32_0 = arith.constant 0 : i32
    %c0_i32_1 = arith.constant 0 : i32
    return %arg0, %c0_i32, %c0_i32_0 : i32, i32, i32
  }
}

</mosaic_0001>

<bundles_post_ra>
// kernel: tpu_custom_call.1
= control target key start
LH: loop header
LB: loop body
LE: loop exit
PB: predicated region body
PF: predicated region fallthrough
CT: control target
= control target key end

     0   :  { %14 = vsyncpa [#allocation3], 0  ;;  %s2069_s0 = inlined_call_operand.hbm [shape: f32[4,4,512], index: 0, kind: input, shape index: {}]   ;;  %s2070_s1 = inlined_call_operand.vmem [shape: f32[8,4], index: 1, kind: input, shape index: {}]   ;;  %s2071_s2 = inlined_call_operand.vmem [shape: f32[4,4], index: 2, kind: input, shape index: {}]   ;;  %s2072_s3 = inlined_call_operand.vmem [shape: f32[4,8,1], index: 3, kind: output, shape index: {0}]   ;;  %s2073_s4 = inlined_call_operand.vmem [shape: f32[4,8,1], index: 4, kind: output, shape index: {1}]   ;;  %s2074_s5 = inlined_call_operand.vmem [shape: f32[4,8,1], index: 5, kind: output, shape index: {2}]   ;;  %s2075_s6 = inlined_call_operand.vmem [shape: f32[4,8,1], index: 6, kind: output, shape index: {3}]   ;;  %s2076_s7 = inlined_call_operand.vmem [shape: f32[4,4,1], index: 7, kind: output, shape index: {4}]   ;;  %s2077_s8 = inlined_call_operand.vmem [shape: f32[4,4,1], index: 8, kind: output, shape index: {5}]  }
   0x1   :  { %16 = vsyncpa [#allocation3 + $0x1], 0  ;;  %s1592_s27 = smov 0   ;;  %s1594_s28 = smov 0  }
   0x2   :  { %s1596_s29 = smov 0   ;;  %s1598_s30 = smov 0  }
   0x3   :  { %s1600_s9 = smov 0   ;;  %s1602_s10 = smov 0  }
   0x4 LB: > { %s1340_s11 = sadd.s32 4294967295, %s1535_s10   ;;  %s34_s12 = sadd.s32 1, %s1531_s9  ;;  %s1535_s10 = sphi %s1602_s10, %s22_s10   ;;  %s1531_s9 = sphi %s1600_s9, %s2085_s9   ;;  %s1527_s30 = sphi %s1598_s30, %s2084_s30   ;;  %s1523_s29 = sphi %s1596_s29, %s2083_s29   ;;  %s1519_s28 = sphi %s1594_s28, %s2082_s28   ;;  %s1515_s27 = sphi %s1592_s27, %s2081_s27  }
   0x5   : > { %p36_p0 = scmp.ge.s32.totalorder %s34_s12, 2  ;;  %s43_s13 = sadd.s32 1, %s1523_s29 }
   0x6   : > { %p50_p1 = scmp.ne.s32.totalorder %s1523_s29, %s1519_s28  ;;  %p51_p2 = scmp.eq.s32.totalorder %s1535_s10, 0 }
   0x7   : > { %s2087_s12 = smov (%p36_p0, %s34_s12), 0  ;;  %p56_p4 = scmp.ne.s32.totalorder %s1519_s28, %s1515_s27 }
   0x8   : > { %p1628_p3 = por %p51_p2, %p50_p1  ;;  %s38_s15 = ssub.s32 %s1531_s9, %s2087_s12 }
   0x9   : > { %p57_p5 = scmp.eq.s32.totalorder %s1340_s11, 0  ;;  %p41_p6 = scmp.eq.s32.totalorder %s38_s15, 0 }
   0xa   : > { %p1386_p8 = scmp.lt.s32.totalorder %s1535_s10, 2  ;;  %s284_s18 = sand.u32 1, %s1523_s29  }
   0xb   : > { %p1635_p7 = por %p57_p5, %p56_p4  ;;  %s1379_s19 = sshll.u32 %s1531_s9, 9 }
   0xc   : > { %s1641_s17 = scalar_select %p41_p6, %s1523_s29, %s43_s13  }
   0xd   : > { %s1344_s20 = sshll.u32 %s284_s18, 5  ;;  %s1648_s23 = scalar_lea.hbm %s2069_s0, %s1379_s19 }
   0xe   : > { %s288_s24 = scalar_lea.vmem [#allocation2], %s1344_s20  ;;  %p1652_p9 = pnand %p1386_p8, %p1628_p3 }
   0xf   : > { %s298_s25 = sshll.u32 %s288_s24, 4  ;;  %s1658_s27 = scalar_lea.sflag [#allocation3], %s284_s18  ;;  %s1656_s25 = int_to_ptr.vmem [resolvable:$true] %s298_s25 }
  0x10   : > { %s1455_s11 = scalar_lea.hbm %s1648_s23, 512  ;;  %p1457_p11 = pneg %p1652_p9 }
  0x11   : > { %p1456_p10 = scmp.ne.s32.totalorder %s1648_s23, %s1455_s11  ;;  %s1460_s15 = scalar_lea.hbm %s2069_s0, 1024 }
  0x12   : > { %p1461_p0 = scmp.lt.u32.totalorder %s1648_s23, %s2069_s0  ;;  %p1462_p1 = scmp.lt.u32.totalorder %s1460_s15, %s1455_s11 }
  0x13   : > { %p1458_p12 = pnand %p1457_p11, %p1456_p10  ;;  %p1464_p3 = scmp.lt.u32.totalorder %s1455_s11, %s1648_s23 }
  0x14   : > { %p1463_p2 = por %p1462_p1, %p1461_p0 }
  0x15   : > { %p1459_p13 = pneg %p1458_p12 }
  0x16   : > { %p1465_p4 = por %p1464_p3, %p1463_p2 }
  0x18   : > { %p1466_p5 = pnand %p1465_p4, %p1459_p13 }
  0x1a   : > { %1469 = shalt.err (!%p1466_p5)
}
  0x1b   : > { %s1470_s18 = scalar_lea.vmem %s1656_s25, 512  ;;  %s1537_s21 = smov [#allocation2]  }
  0x1c   : > { %p1471_p6 = scmp.ne.s32.totalorder %s1656_s25, %s1470_s18  ;;  %s1475_s22 = sshll.u32 %s1537_s21, 4  ;;  %s1476_s22 = int_to_ptr.vmem [resolvable:$false] %s1475_s22 }
  0x1d   : > { %s1477_s24 = scalar_lea.vmem %s1476_s22, 1024  ;;  %p1478_p12 = scmp.lt.s32.totalorder %s1656_s25, %s1476_s22 }
  0x1e   : > { %p1473_p8 = pnand %p1471_p6, %p1457_p11  ;;  %p1479_p0 = scmp.lt.s32.totalorder %s1477_s24, %s1470_s18 }
  0x20   : > { %p1474_p10 = pneg %p1473_p8  ;;  %p1480_p1 = por %p1479_p0, %p1478_p12 }
  0x22   : > { %p1481_p2 = pnand %p1480_p1, %p1474_p10 }
  0x24   : > { %1484 = shalt.err (!%p1481_p2)
}
  0x25   : > { %s1538_s11 = smov 256   ;;  %s1539_s13 = smov 16  }
  0x26   : > { %1385 = dma.hbm_to_vmem [thread:$0]  (!%p1652_p9), %s1648_s23, 512, %s1656_s25, %s1658_s27, %s1538_s11, %s1538_s11, %s1539_s13  }
  0x27   : > { %p1348_p11 = scmp.ge.s32.totalorder %s1535_s10, 1  ;;  %p306_p13 = scmp.lt.s32.totalorder %s1535_s10, 3 }
  0x29   : > { %p307_p3 = pnand %p1348_p11, %p306_p13 }
  0x2a   : > { %s312_s14 = sand.u32 (!%p307_p3), 1, %s1519_s28  }
  0x2b   : > { %310 = sbr.rel (%p307_p3) target bundleno = 375 (0x177), region = 32  ;;  %s1349_s15 = sshll.u32 (!%p307_p3), %s312_s14, 5 }
  0x2c   : > { %s313_s19 = scalar_lea.sflag (!%p307_p3), [#allocation3], %s312_s14  ;;  %s1689_s20 = scalar_lea.vmem (!%p307_p3), [#allocation2], %s1349_s15 }
  0x32   : > { %1510 = dma.done.wait (%p1635_p7), %s313_s19, 512  }
  0x33   : > { %1512 = vsyncadd (%p1635_p7), %s313_s19, 4294966784  ;;  %v1540_v0 = vmov 0   ;;  %v432_v1 = vld [vmem:[%s2071_s2] sm:$0xf]  ;;  %v1541_v3 = vmov 1   ;;  %v1542_v4 = vmov 2   ;;  %v442_v7 = vlaneseq }
  0x34   : > { %1446 = vset.pattern.permute.xlu1 %v1540_v0  ;;  %1444 = vset.pattern.permute.xlu0 %v1540_v0  ;;  %v431_v2 = vld [vmem:[%s2070_s1] sm:$0xff]  ;;  %v1543_v5 = vmov 3   ;;  %s1350_s16 = sshll.u32 %s1527_s30, 1  ;;  %vm417_vm0 = vcmask 7168   ;;  %v1544_v6 = vmov -inf   ;;  %v1729_v14 = vld [vmem:[%s1689_s20 + $0x8] sm:$0xff] }
  0x35   : > { %669 = vperm.xlu1 %1446, %v432_v1   ;;  %437 = vperm.xlu0 %1444, %v431_v2   ;;  %p377_p7 = scmp.lt.s32.totalorder %s1350_s16, 3  ;;  %v443_v8 = vshrl.u32 %v442_v7, 7  ;;  %v1722_v11 = vld [vmem:[%s1689_s20] sm:$0xff]  ;;  %v1740_v19 = vld [vmem:[%s1689_s20 + $0x10] sm:$0xff]  ;;  %v1749_v23 = vld [vmem:[%s1689_s20 + $0x18] sm:$0xff]  ;;  %vm739_vm1 = vcmask 1043456  }
  0x36   : > { %vm426_vm2 = vcmask 3072  }
  0x37   : > { %s2089_s16 = smov (!%p377_p7, %s1350_s16), 3  ;;  %v1717_v9 = vsub.s32 0, %v443_v8  ;;  %v1719_v10 = vsub.s32 4, %v443_v8  ;;  %v1724_v12 = vsub.s32 1, %v443_v8  ;;  %v1726_v13 = vsub.s32 5, %v443_v8 }
  0x38   : > { %s1705_s18 = sshll.u32 %s2089_s16, 3  ;;  %v1735_v17 = vsub.s32 2, %v443_v8  ;;  %v1737_v18 = vsub.s32 6, %v443_v8  ;;  %v584_v41 = vsub.s32 3, %v443_v8  ;;  %v588_v42 = vsub.s32 7, %v443_v8  ;;  %s1359_s14 = sshll.u32 %s2089_s16, 2 }
  0x39   : > { %1447 = vset.pattern.permute.xlu1 %v1541_v3  ;;  %1445 = vset.pattern.permute.xlu0 %v1541_v3  ;;  %s1711_s24 = scalar_lea.vmem %s2074_s5, %s1705_s18  ;;  %v445_v15 = vrot.slane %v1722_v11, %v1717_v9  ;;  %v449_v16 = vrot.slane %v1722_v11, %v1719_v10  ;;  %v453_v20 = vrot.slane %v1729_v14, %v1717_v9  ;;  %s1966_s13 = scalar_lea.vmem %s2075_s6, %s1705_s18 }
  0x3a   : > { %677 = vperm.xlu1 %1447, %v432_v1   ;;  %483 = vperm.xlu0 %1445, %v431_v2   ;;  %422 = vst.msk [vmem:[%s1711_s24] sm:$0xff] %vm417_vm0, %v1544_v6  ;;  %423 = vst.msk [vmem:[%s1711_s24 + $0x8] sm:$0xff] %vm417_vm0, %v1544_v6  ;;  %v489_v21 = vrot.slane %v1722_v11, %v1724_v12  ;;  %v493_v22 = vrot.slane %v1722_v11, %v1726_v13  ;;  %s1976_s20 = scalar_lea.vmem %s2076_s7, %s1359_s14  ;;  %s1989_s26 = scalar_lea.vmem %s2077_s8, %s1359_s14 }
  0x3b   : > { %v1752_v24 = vrot.slane %v445_v15, %v1717_v9  ;;  %v1755_v25 = vrot.slane %v449_v16, %v1717_v9  ;;  %v497_v26 = vrot.slane %v1729_v14, %v1724_v12  ;;  %v457_v27 = vrot.slane %v1729_v14, %v1719_v10  ;;  %s1999_s21 = scalar_lea.vmem %s2072_s3, %s1705_s18  ;;  %s2009_s11 = scalar_lea.vmem %s2073_s4, %s1705_s18 }
  0x3c   : > { %v537_v28 = vrot.slane %v1722_v11, %v1735_v17  ;;  %v501_v29 = vrot.slane %v1729_v14, %v1726_v13  ;;  %v816_v30 = vrot.slane %v1740_v19, %v1724_v12  ;;  %v820_v31 = vrot.slane %v1740_v19, %v1726_v13 }
  0x3d   : > { %v541_v32 = vrot.slane %v1722_v11, %v1737_v18  ;;  %v545_v33 = vrot.slane %v1729_v14, %v1735_v17  ;;  %v549_v34 = vrot.slane %v1729_v14, %v1737_v18  ;;  %v824_v35 = vrot.slane %v1749_v23, %v1724_v12 }
  0x3e   : > { %1448 = vset.pattern.permute.xlu1 %v1542_v4  ;;  %1449 = vset.pattern.permute.xlu0 %v1542_v4  ;;  %v473_v36 = vrot.slane %v453_v20, %v1717_v9  ;;  %v509_v37 = vrot.slane %v489_v21, %v1724_v12  ;;  %v513_v38 = vrot.slane %v493_v22, %v1724_v12 }
  0x3f   : > { %531 = vperm.xlu1 %1448, %v431_v2   ;;  %689 = vperm.xlu0 %1449, %v432_v1   ;;  %v776_v39 = vrot.slane %v1740_v19, %v1717_v9  ;;  %v1783_v40 = vrot.slane %v497_v26, %v1724_v12  ;;  %v477_v43 = vrot.slane %v457_v27, %v1717_v9 }
  0x40   : > { %v1787_v44 = vrot.slane %v537_v28, %v1735_v17  ;;  %v521_v45 = vrot.slane %v501_v29, %v1724_v12  ;;  %v1791_v46 = vrot.slane %v816_v30, %v1724_v12  ;;  %v1794_v47 = vrot.slane %v820_v31, %v1724_v12 }
  0x41   : > { %v1797_v48 = vrot.slane %v541_v32, %v1735_v17  ;;  %v1800_v49 = vrot.slane %v545_v33, %v1735_v17  ;;  %v1803_v50 = vrot.slane %v549_v34, %v1735_v17  ;;  %v1806_v51 = vrot.slane %v824_v35, %v1724_v12 }
  0x42   : > { %v780_v52 = vrot.slane %v1740_v19, %v1719_v10  ;;  %v784_v53 = vrot.slane %v1749_v23, %v1717_v9  ;;  %v1813_v54 = vrot.slane %v776_v39, %v1717_v9  ;;  %v860_v55 = vrot.slane %v1740_v19, %v1735_v17 }
  0x43   : > { %1450 = vset.pattern.permute.xlu1 %v1543_v5  ;;  %1451 = vset.pattern.permute.xlu0 %v1540_v0  ;;  %v585_v56 = vrot.slane %v1722_v11, %v584_v41  ;;  %v589_v57 = vrot.slane %v1722_v11, %v588_v42  ;;  %v864_v58 = vrot.slane %v1740_v19, %v1737_v18 }
  0x44   : > { %579 = vperm.xlu1 %1450, %v431_v2   ;;  %990 = vperm.xlu0 %1451, %v432_v1   ;;  %v868_v59 = vrot.slane %v1749_v23, %v1735_v17  ;;  %v593_v60 = vrot.slane %v1729_v14, %v584_v41  ;;  %v597_v61 = vrot.slane %v1729_v14, %v588_v42 }
  0x45   : > { %v788_v62 = vrot.slane %v1749_v23, %v1719_v10  ;;  %v828_v63 = vrot.slane %v1749_v23, %v1726_v13  ;;  %v904_v0 = vrot.slane %v1740_v19, %v584_v41  ;;  %v912_v2 = vrot.slane %v1749_v23, %v584_v41 }
  0x46   : > { %v1835_v6 = vrot.slane %v780_v52, %v1717_v9  ;;  %v1838_v7 = vrot.slane %v784_v53, %v1717_v9  ;;  %v1841_v8 = vrot.slane %v860_v55, %v1735_v17  ;;  %v916_v10 = vrot.slane %v1749_v23, %v588_v42 }
  0x47   : > { %v1844_v11 = vrot.slane %v585_v56, %v584_v41  ;;  %v1846_v13 = vrot.slane %v589_v57, %v584_v41  ;;  %v1849_v14 = vrot.slane %v864_v58, %v1735_v17  ;;  %v1852_v15 = vrot.slane %v868_v59, %v1735_v17 }
  0x48   : > { %701 = vperm.xlu1 %1450, %v432_v1   ;;  %1454 = vset.pattern.permute.xlu0 %v1543_v5  ;;  %v1854_v16 = vrot.slane %v593_v60, %v584_v41  ;;  %v848_v20 = vrot.slane %v828_v63, %v1724_v12  ;;  %v1860_v21 = vrot.slane %v904_v0, %v584_v41 }
  0x49   : > { %1022 = vperm.xlu0 %1454, %v432_v1   ;;  %v1871_v30 = vrot.slane %v916_v10, %v584_v41 }
  0x4c   : > { %1452 = vset.pattern.permute.xlu1 %v1541_v3  ;;  %v872_v3 = vrot.slane %v1749_v23, %v1737_v18  ;;  %v1856_v18 = vrot.slane %v597_v61, %v584_v41  ;;  %v1864_v23 = vrot.slane %v912_v2, %v584_v41 }
  0x4d   : > { %998 = vperm.xlu1 %1452, %v432_v1  }
  0x4e   : > { %v1867_v26 = vrot.slane %v872_v3, %v1735_v17 }
  0x51   : > { %1453 = vset.pattern.permute.xlu1 %v1542_v4 }
  0x52   : > { %1010 = vperm.xlu1 %1453, %v432_v1   ;;  %v908_v1 = vrot.slane %v1740_v19, %v588_v42  ;;  %v808_v19 = vrot.slane %v788_v62, %v1717_v9 }
  0x54   : > { %v1862_v22 = vrot.slane %v908_v1, %v584_v41 }
  0xb4   : > { %v670_v4 = vpop.permute.xlu1 %669  ;;  %v438_v5 = vpop.permute.xlu0 %437 }
  0xb5   : > { %v672_v27 = vmul.f32 %v670_v4, %v1752_v24  ;;  %v673_v28 = vmul.f32 %v670_v4, %v1755_v25  ;;  %v674_v29 = vmul.f32 %v670_v4, %v473_v36  ;;  %v478_v12 = vmul.f32 %v1752_v24, %v438_v5 }
  0xb6   : > { %v479_v32 = vmul.f32 %v1755_v25, %v438_v5  ;;  %v480_v33 = vmul.f32 %v473_v36, %v438_v5  ;;  %v481_v34 = vmul.f32 %v477_v43, %v438_v5  ;;  %v809_v17 = vmul.f32 %v1813_v54, %v438_v5 }
  0xb7   : > { %v810_v41 = vmul.f32 %v1835_v6, %v438_v5  ;;  %v811_v24 = vmul.f32 %v1838_v7, %v438_v5  ;;  %v812_v25 = vmul.f32 %v808_v19, %v438_v5 }
  0xb9   : > { %v678_v31 = vpop.permute.xlu1 %677  ;;  %v484_v9 = vpop.permute.xlu0 %483 }
  0xba   : > { %v680_v35 = vmul.f32 %v678_v31, %v509_v37  ;;  %v681_v39 = vmul.f32 %v678_v31, %v513_v38  ;;  %v522_v42 = vmul.f32 %v509_v37, %v484_v9  ;;  %v523_v52 = vmul.f32 %v513_v38, %v484_v9 }
  0xbb   : > { %v524_v53 = vmul.f32 %v1783_v40, %v484_v9  ;;  %v525_v55 = vmul.f32 %v521_v45, %v484_v9  ;;  %v682_v56 = vmul.f32 %v678_v31, %v1783_v40  ;;  %v849_v57 = vmul.f32 %v1791_v46, %v484_v9 }
  0xbc   : > { %v684_v36 = vadd.f32 %v680_v35, %v672_v27  ;;  %v685_v43 = vadd.f32 %v681_v39, %v673_v28  ;;  %v526_v58 = vadd.f32 %v522_v42, %v478_v12  ;;  %v850_v37 = vmul.f32 %v1794_v47, %v484_v9 }
  0xbd   : > { %v527_v38 = vadd.f32 %v523_v52, %v479_v32  ;;  %v528_v60 = vadd.f32 %v524_v53, %v480_v33  ;;  %v529_v45 = vadd.f32 %v525_v55, %v481_v34  ;;  %v851_v62 = vmul.f32 %v1806_v51, %v484_v9 }
  0xbe   : > { %v1882_v59 = vpop.permute.xlu1 %531  ;;  %v690_v61 = vpop.permute.xlu0 %689  ;;  %v686_v2 = vadd.f32 %v682_v56, %v674_v29  ;;  %v853_v19 = vadd.f32 %v849_v57, %v809_v17  ;;  %v854_v27 = vadd.f32 %v850_v37, %v810_v41  ;;  %v852_v28 = vmul.f32 %v848_v20, %v484_v9 }
  0xbf   : > { %v570_v40 = vmul.f32 %v1787_v44, %v1882_v59  ;;  %v571_v63 = vmul.f32 %v1797_v48, %v1882_v59  ;;  %v572_v0 = vmul.f32 %v1800_v49, %v1882_v59  ;;  %v692_v1 = vmul.f32 %v690_v61, %v1787_v44 }
  0xc0   : > { %v693_v3 = vmul.f32 %v690_v61, %v1797_v48  ;;  %v694_v4 = vmul.f32 %v690_v61, %v1800_v49  ;;  %v573_v5 = vmul.f32 %v1803_v50, %v1882_v59  ;;  %v855_v29 = vadd.f32 %v851_v62, %v811_v24 }
  0xc1   : > { %v574_v10 = vadd.f32 %v570_v40, %v526_v58  ;;  %v575_v31 = vadd.f32 %v571_v63, %v527_v38  ;;  %v576_v12 = vadd.f32 %v572_v0, %v528_v60  ;;  %v696_v32 = vadd.f32 %v692_v1, %v684_v36 }
  0xc2   : > { %v697_v33 = vadd.f32 %v693_v3, %v685_v43  ;;  %v698_v34 = vadd.f32 %v694_v4, %v686_v2  ;;  %v577_v44 = vadd.f32 %v573_v5, %v529_v45  ;;  %v893_v49 = vmul.f32 %v1841_v8, %v1882_v59 }
  0xc3   : > { %v1896_v35 = vpop.permute.xlu1 %579  ;;  %v991_v48 = vpop.permute.xlu0 %990  ;;  %v894_v17 = vmul.f32 %v1849_v14, %v1882_v59  ;;  %v895_v52 = vmul.f32 %v1852_v15, %v1882_v59  ;;  %v1913_v53 = vadd.f32 %v852_v28, %v812_v25 }
  0xc4   : > { %v618_v50 = vmul.f32 %v1844_v11, %v1896_v35  ;;  %v619_v39 = vmul.f32 %v1846_v13, %v1896_v35  ;;  %v620_v20 = vmul.f32 %v1854_v16, %v1896_v35  ;;  %v621_v9 = vmul.f32 %v1856_v18, %v1896_v35 }
  0xc5   : > { %v993_v42 = vmul.f32 %v991_v48, %v1813_v54  ;;  %v994_v36 = vmul.f32 %v991_v48, %v1835_v6  ;;  %v995_v18 = vmul.f32 %v991_v48, %v1838_v7  ;;  %v897_v43 = vadd.f32 %v893_v49, %v853_v19 }
  0xc6   : > { %v622_v55 = vadd.f32 %v618_v50, %v574_v10  ;;  %v623_v41 = vadd.f32 %v619_v39, %v575_v31  ;;  %v624_v56 = vadd.f32 %v620_v20, %v576_v12  ;;  %v1915_v57 = vadd.f32 %v621_v9, %v577_v44 }
  0xc7   : > { %v702_v24 = vpop.permute.xlu1 %701  ;;  %v937_v54 = vmul.f32 %v1860_v21, %v1896_v35  ;;  %v898_v62 = vadd.f32 %v894_v17, %v854_v27  ;;  %v899_v7 = vadd.f32 %v895_v52, %v855_v29 }
  0xc8   : > { %v704_v58 = vmul.f32 %v702_v24, %v1844_v11  ;;  %v705_v37 = vmul.f32 %v702_v24, %v1846_v13  ;;  %v706_v25 = vmul.f32 %v702_v24, %v1854_v16  ;;  %v656_v38 = vmin.f32 %v622_v55, %v623_v41  ;;  %v1023_v28 = vpop.permute.xlu0 %1022 }
  0xc9   : > { %v657_v60 = vmin.f32 %v624_v56, %v1915_v57  ;;  %v648_v61 = vmax.f32 %v622_v55, %v623_v41  ;;  %v649_v45 = vmax.f32 %v624_v56, %v1915_v57  ;;  %v938_v11 = vmul.f32 %v1862_v22, %v1896_v35 }
  0xca   : > { %v708_v6 = vadd.f32 %v704_v58, %v696_v32  ;;  %v709_v40 = vadd.f32 %v705_v37, %v697_v33  ;;  %v710_v63 = vadd.f32 %v706_v25, %v698_v34  ;;  %v939_v13 = vmul.f32 %v1864_v23, %v1896_v35 }
  0xcb   : > { %v658_v0 = vmin.f32 %v656_v38, %v657_v60  ;;  %v650_v1 = vmax.f32 %v648_v61, %v649_v45  ;;  %v1932_v5 = vadd.f32 %v937_v54, %v897_v43  ;;  %v1026_v20 = vmul.f32 %v1023_v28, %v1862_v22 }
  0xcc   : > { %v999_v16 = vpop.permute.xlu1 %998  ;;  %v740_v2 = vsel %vm739_vm1, %v708_v6, 0.0  ;;  %v741_v3 = vsel %vm739_vm1, %v709_v40, 0.0  ;;  %v753_v4 = vmul.f32 %v708_v6, %v708_v6  ;;  %v754_v12 = vmul.f32 %v709_v40, %v709_v40 }
  0xcd   : > { %659 = vmin.xlane.f32.xlu0 %v658_v0  ;;  %651 = vmax.xlane.f32.xlu1 %v650_v1  ;;  %v1001_v10 = vmul.f32 %v999_v16, %v1791_v46  ;;  %v1002_v19 = vmul.f32 %v999_v16, %v1794_v47  ;;  %v1003_v27 = vmul.f32 %v999_v16, %v1806_v51  ;;  %v743_v48 = vsel %vm739_vm1, %v710_v63, 0.0 }
  0xce   : > { %v742_v31 = vadd.f32 %v741_v3, %v740_v2  ;;  %v755_v32 = vmul.f32 %v710_v63, %v710_v63  ;;  %v757_v33 = vsel %vm739_vm1, %v753_v4, 0.0  ;;  %v758_v50 = vsel %vm739_vm1, %v754_v12, 0.0 }
  0xcf   : > { %v1005_v34 = vadd.f32 %v1001_v10, %v993_v42  ;;  %v1006_v44 = vadd.f32 %v1002_v19, %v994_v36  ;;  %v1007_v29 = vadd.f32 %v1003_v27, %v995_v18  ;;  %v1025_v47 = vmul.f32 %v1023_v28, %v1860_v21 }
  0xd0   : > { %v744_v49 = vadd.f32 %v743_v48, %v742_v31  ;;  %v760_v46 = vsel %vm739_vm1, %v755_v32, 0.0  ;;  %v759_v51 = vadd.f32 %v758_v50, %v757_v33  ;;  %v627_v9 = vadd.f32 %v623_v41, %v622_v55  ;;  %v647_v50 = vld [vmem:[%s1711_s24] sm:$0xff] }
  0xd1   : > { %v1011_v39 = vpop.permute.xlu1 %1010  ;;  %v636_v17 = vmul.f32 %v622_v55, %v622_v55  ;;  %v637_v36 = vmul.f32 %v623_v41, %v623_v41  ;;  %v942_v43 = vadd.f32 %v938_v11, %v898_v62  ;;  %v1027_v54 = vmul.f32 %v1023_v28, %v1864_v23 }
  0xd2   : > { %v1013_v52 = vmul.f32 %v1011_v39, %v1841_v8  ;;  %v1014_v42 = vmul.f32 %v1011_v39, %v1849_v14  ;;  %v1015_v24 = vmul.f32 %v1011_v39, %v1852_v15  ;;  %747 = vadd.xlane.f32.xlu1 %v744_v49  ;;  %v761_v18 = vadd.f32 %v760_v46, %v759_v51 }
  0xd3   : > { %v628_v58 = vadd.f32 %v627_v9, %v624_v56  ;;  %v638_v25 = vmul.f32 %v624_v56, %v624_v56  ;;  %v640_v38 = vadd.f32 %v637_v36, %v636_v17  ;;  %v639_v8 = vmul.f32 %v1915_v57, %v1915_v57 }
  0xd4   : > { %v1017_v21 = vadd.f32 %v1013_v52, %v1005_v34  ;;  %v1018_v37 = vadd.f32 %v1014_v42, %v1006_v44  ;;  %764 = vadd.xlane.f32.xlu0 %v761_v18  ;;  %v896_v14 = vmul.f32 %v1867_v26, %v1882_v59  ;;  %v940_v15 = vmul.f32 %v1871_v30, %v1896_v35 }
  0xd5   : > { %v629_v22 = vadd.f32 %v628_v58, %v1915_v57  ;;  %v1019_v55 = vadd.f32 %v1015_v24, %v1007_v29  ;;  %v641_v60 = vadd.f32 %v640_v38, %v638_v25  ;;  %v943_v61 = vadd.f32 %v939_v13, %v899_v7  ;;  %v1368_v38 = vld [vmem:[%s1711_s24 + $0x8] sm:$0xff] }
  0xd6   : > { %v1029_v41 = vadd.f32 %v1025_v47, %v1017_v21  ;;  %v1030_v23 = vadd.f32 %v1026_v20, %v1018_v37  ;;  %v900_v56 = vadd.f32 %v896_v14, %v1913_v53  ;;  %v956_v45 = vmul.f32 %v1932_v5, %v1932_v5 }
  0xd7   : > { %630 = vadd.xlane.f32.xlu1 %v629_v22  ;;  %v957_v62 = vmul.f32 %v942_v43, %v942_v43  ;;  %v642_v6 = vadd.f32 %v641_v60, %v639_v8  ;;  %v947_v57 = vadd.f32 %v942_v43, %v1932_v5  ;;  %v969_v26 = vmax.f32 %v1932_v5, %v942_v43 }
  0xd8   : > { %v944_v40 = vadd.f32 %v940_v15, %v900_v56  ;;  %v978_v30 = vmin.f32 %v1932_v5, %v942_v43  ;;  %v1031_v35 = vadd.f32 %v1027_v54, %v1019_v55  ;;  %v1076_v7 = vmul.f32 %v1029_v41, %v1029_v41 }
  0xd9   : > { %v960_v59 = vadd.f32 %v957_v62, %v956_v45  ;;  %643 = vadd.xlane.f32.xlu0 %v642_v6  ;;  %v1077_v63 = vmul.f32 %v1030_v23, %v1030_v23  ;;  %v958_v1 = vmul.f32 %v943_v61, %v943_v61  ;;  %v948_v11 = vadd.f32 %v947_v57, %v943_v61 }
  0xda   : > { %v970_v53 = vmax.f32 %v943_v61, %v944_v40  ;;  %v979_v0 = vmin.f32 %v943_v61, %v944_v40  ;;  %v1062_v13 = vsel %vm739_vm1, %v1029_v41, 0.0  ;;  %v1063_v16 = vsel %vm739_vm1, %v1030_v23, 0.0 }
  0xdb   : > { %v961_v4 = vadd.f32 %v960_v59, %v958_v1  ;;  %v1078_v5 = vmul.f32 %v1031_v35, %v1031_v35  ;;  %v1080_v10 = vsel %vm739_vm1, %v1076_v7, 0.0  ;;  %v1081_v19 = vsel %vm739_vm1, %v1077_v63, 0.0 }
  0xdc   : > { %v971_v2 = vmax.f32 %v969_v26, %v970_v53  ;;  %v980_v3 = vmin.f32 %v978_v30, %v979_v0  ;;  %v1545_v27 = vmov inf   ;;  %v959_v28 = vmul.f32 %v944_v40, %v944_v40 }
  0xdd   : > { %424 = vst.msk [vmem:[%s1966_s13] sm:$0xff] %vm417_vm0, %v1545_v27  ;;  %425 = vst.msk [vmem:[%s1966_s13 + $0x8] sm:$0xff] %vm417_vm0, %v1545_v27  ;;  %v1546_v31 = vmov 0.0   ;;  %v949_v12 = vadd.f32 %v948_v11, %v944_v40  ;;  %v1064_v33 = vadd.f32 %v1063_v16, %v1062_v13  ;;  %v1082_v34 = vadd.f32 %v1081_v19, %v1080_v10 }
  0xde   : > { %972 = vmax.xlane.f32.xlu1 %v971_v2  ;;  %981 = vmin.xlane.f32.xlu0 %v980_v3  ;;  %427 = vst.msk [vmem:[%s1976_s20] sm:$0xf] %vm426_vm2, %v1546_v31  ;;  %v962_v32 = vadd.f32 %v961_v4, %v959_v28  ;;  %428 = vst.msk [vmem:[%s1976_s20 + $0x4] sm:$0xf] %vm426_vm2, %v1546_v31  ;;  %v1065_v44 = vsel %vm739_vm1, %v1031_v35, 0.0  ;;  %v1083_v29 = vsel %vm739_vm1, %v1078_v5, 0.0 }
  0xdf   : > { %429 = vst.msk [vmem:[%s1989_s26] sm:$0xf] %vm426_vm2, %v1546_v31  ;;  %430 = vst.msk [vmem:[%s1989_s26 + $0x4] sm:$0xf] %vm426_vm2, %v1546_v31  ;;  %v1066_v48 = vadd.f32 %v1065_v44, %v1064_v33  ;;  %v1084_v49 = vadd.f32 %v1083_v29, %v1082_v34 }
  0xe0   : > { %418 = vst.msk [vmem:[%s1999_s21] sm:$0xff] %vm417_vm0, %v1546_v31  ;;  %419 = vst.msk [vmem:[%s1999_s21 + $0x8] sm:$0xff] %vm417_vm0, %v1546_v31 }
  0xe1   : > { %420 = vst.msk [vmem:[%s2009_s11] sm:$0xff] %vm417_vm0, %v1546_v31  ;;  %421 = vst.msk [vmem:[%s2009_s11 + $0x8] sm:$0xff] %vm417_vm0, %v1546_v31 }
  0xe2   : > { %950 = vadd.xlane.f32.xlu1 %v949_v12  ;;  %963 = vadd.xlane.f32.xlu0 %v962_v32 }
  0xe4   : > { %v655_v46 = vld [vmem:[%s1966_s13] sm:$0xff]  ;;  %v1370_v8 = vld [vmem:[%s1966_s13 + $0x8] sm:$0xff] }
  0xe5   : > { %v738_v9 = vld [vmem:[%s1976_s20] sm:$0xf]  ;;  %v1372_v62 = vld [vmem:[%s1976_s20 + $0x4] sm:$0xf] }
  0xe6   : > { %1069 = vadd.xlane.f32.xlu1 %v1066_v48  ;;  %1087 = vadd.xlane.f32.xlu0 %v1084_v49  ;;  %v752_v42 = vld [vmem:[%s1989_s26] sm:$0xf]  ;;  %v1374_v57 = vld [vmem:[%s1989_s26 + $0x4] sm:$0xf] }
  0xe7   : > { %v626_v36 = vld [vmem:[%s1999_s21] sm:$0xff]  ;;  %v1364_v55 = vld [vmem:[%s1999_s21 + $0x8] sm:$0xff] }
  0xe8   : > { %v635_v58 = vld [vmem:[%s2009_s11] sm:$0xff]  ;;  %v1366_v61 = vld [vmem:[%s2009_s11 + $0x8] sm:$0xff] }
 0x15a   : > { %v652_v47 = vpop.xlane.xlu1 %651  ;;  %v660_v39 = vpop.xlane.xlu0 %659 }
 0x15b   : > { %v653_v51 = vmax.f32 %v647_v50, %v652_v47  ;;  %v661_v20 = vmin.f32 %v655_v46, %v660_v39 }
 0x15d   : > { %654 = vst.msk [vmem:[%s1711_s24] sm:$0xff] %vm417_vm0, %v653_v51  ;;  %662 = vst.msk [vmem:[%s1966_s13] sm:$0xff] %vm417_vm0, %v661_v20 }
 0x15f   : > { %v748_v17 = vpop.xlane.xlu1 %747 }
 0x160   : > { %v749_v52 = vadd.f32 %v748_v17, %v738_v9 }
 0x161   : > { %v765_v24 = vpop.xlane.xlu0 %764 }
 0x162   : > { %751 = vst.msk [vmem:[%s1976_s20] sm:$0xf] %vm426_vm2, %v749_v52  ;;  %v766_v18 = vadd.f32 %v765_v24, %v752_v42 }
 0x164   : > { %v631_v43 = vpop.xlane.xlu1 %630  ;;  %767 = vst.msk [vmem:[%s1989_s26] sm:$0xf] %vm426_vm2, %v766_v18 }
 0x165   : > { %v632_v54 = vadd.f32 %v631_v43, %v626_v36 }
 0x166   : > { %v644_v21 = vpop.xlane.xlu0 %643 }
 0x167   : > { %634 = vst.msk [vmem:[%s1999_s21] sm:$0xff] %vm417_vm0, %v632_v54  ;;  %v645_v37 = vadd.f32 %v644_v21, %v635_v58 }
 0x169   : > { %646 = vst.msk [vmem:[%s2009_s11] sm:$0xff] %vm417_vm0, %v645_v37 }
 0x16b   : > { %v973_v25 = vpop.xlane.xlu1 %972  ;;  %v982_v22 = vpop.xlane.xlu0 %981 }
 0x16c   : > { %v974_v14 = vmax.f32 %v1368_v38, %v973_v25  ;;  %v983_v15 = vmin.f32 %v1370_v8, %v982_v22 }
 0x16e   : > { %1369 = vst.msk [vmem:[%s1711_s24 + $0x8] sm:$0xff] %vm417_vm0, %v974_v14  ;;  %1371 = vst.msk [vmem:[%s1966_s13 + $0x8] sm:$0xff] %vm417_vm0, %v983_v15 }
 0x16f   : > { %v951_v41 = vpop.xlane.xlu1 %950  ;;  %v964_v23 = vpop.xlane.xlu0 %963 }
 0x170   : > { %v952_v60 = vadd.f32 %v1364_v55, %v951_v41  ;;  %v965_v56 = vadd.f32 %v1366_v61, %v964_v23 }
 0x172   : > { %1365 = vst.msk [vmem:[%s1999_s21 + $0x8] sm:$0xff] %vm417_vm0, %v952_v60  ;;  %1367 = vst.msk [vmem:[%s2009_s11 + $0x8] sm:$0xff] %vm417_vm0, %v965_v56 }
 0x173   : > { %v1070_v45 = vpop.xlane.xlu1 %1069  ;;  %v1088_v6 = vpop.xlane.xlu0 %1087 }
 0x174   : > { %v1071_v40 = vadd.f32 %v1372_v62, %v1070_v45  ;;  %v1089_v26 = vadd.f32 %v1374_v57, %v1088_v6 }
 0x176   : > { %1373 = vst.msk [vmem:[%s1976_s20 + $0x4] sm:$0xf] %vm426_vm2, %v1071_v40  ;;  %1375 = vst.msk [vmem:[%s1989_s26 + $0x4] sm:$0xf] %vm426_vm2, %v1089_v26 }
 0x177 PF: > { %s22_s10 = sadd.s32 1, %s1535_s10   ;;  %s2081_s27 = smov %s1519_s28 }
 0x178   : > { %p19_p9 = scmp.ge.s32.totalorder %s22_s10, 4   ;;  %s2082_s28 = smov %s1523_s29 }
 0x179   : > { %s2083_s29 = smov %s1641_s17  ;;  %s2084_s30 = smov %s1531_s9 }
 0x17a   : > { %s2085_s9 = smov %s2087_s12  ;;  %21 = sbr.rel (!%p19_p9) target bundleno = 4 (0x4), region = 151 }
 0x181   :  { %1198 = vsyncpa [#allocation3], 1 }
 0x182   :  { %1200 = vsyncpa [#allocation3 + $0x1], 1 }

</bundles_post_ra>
